<compile_context>
chip_gen: v6e
topology: v6e:2x2x1
jax: 0.10.0
libtpu: 0.0.40
codegen_flags: <defaults>
</compile_context>

<pallas_src>
import functools

import jax
import jax.numpy as jnp
from jax import lax
from jax.experimental import pallas as pl
from jax.experimental.pallas import tpu as pltpu


# ---------------------------------------------------------------------------
# Fused DoubleConv kernel (single grid step, everything VMEM-resident).
# ---------------------------------------------------------------------------
def _double_conv_kernel(x_ref, w1_ref, p1_ref, g1_ref, bt1_ref,
                        w2_ref, p2_ref, g2_ref, bt2_ref,
                        o_ref,
                        xh1_ref, xh2_ref,
                        *, N, H, W, Cin, Cmid, Cout, eps):
    del Cin  # layout is fully encoded in the ref shapes
    inv_cnt = 1.0 / float(N * H * W)

    def conv3x3_folded(xh_ref, x_val, w_ref):
        # x_val: (N, H, W*Ci) lane-folded activations.
        # xh_ref: (N, H+2, W*Ci) scratch with a row halo only (W padding is
        #         folded into the weight matrices).
        # w_ref:  (3, W*Ci, W*Co) block-banded folded weights.
        wc_in = xh_ref.shape[2]
        wc_out = w_ref.shape[2]
        zrow = jnp.zeros((N, 1, wc_in), jnp.float32)
        xh_ref[:, 0:1, :] = zrow                 # zero ONLY the halo rows
        xh_ref[:, H + 1:H + 2, :] = zrow
        xh_ref[:, 1:H + 1, :] = x_val
        y = jnp.zeros((N * H, wc_out), jnp.float32)
        for ky in range(3):                      # 3 dense MXU matmuls / stage
            xs = xh_ref[:, ky:ky + H, :].reshape(N * H, wc_in)
            y = y + jnp.dot(xs, w_ref[ky], preferred_element_type=jnp.float32)
        return y

    def bn_relu(y, p_ref, g_ref, b_ref):
        # PyTorch training-mode BatchNorm (biased batch variance), two-pass
        # centered accumulation.  y is (N*H, W*C), lane-folded; p_ref is the
        # (W*C, W*C) selector that sums over W and broadcasts per-channel
        # values back across the folded lanes in one MXU op.
        sum_rows = jnp.sum(y, axis=0, keepdims=True)                  # (1, W*C)
        mean_f = jnp.dot(sum_rows, p_ref[...],
                         preferred_element_type=jnp.float32) * inv_cnt
        yc = y - mean_f
        ss_rows = jnp.sum(yc * yc, axis=0, keepdims=True)
        var_f = jnp.dot(ss_rows, p_ref[...],
                        preferred_element_type=jnp.float32) * inv_cnt
        scale = g_ref[...] * lax.rsqrt(var_f + eps)                   # EUP slot
        return jnp.maximum(yc * scale + b_ref[...], 0.0)

    # ---------------- stage 1: conv1 + BN1 + ReLU ----------------
    y1 = conv3x3_folded(xh1_ref, x_ref[...], w1_ref)        # (N*H, W*Cmid)
    a1 = bn_relu(y1, p1_ref, g1_ref, bt1_ref)

    # ---------------- stage 2: conv2 + BN2 + ReLU ----------------
    y2 = conv3x3_folded(xh2_ref, a1.reshape(N, H, W * Cmid), w2_ref)
    a2 = bn_relu(y2, p2_ref, g2_ref, bt2_ref)                # (N*H, W*Cout)

    # Single dense, lane-dense output store (output already lane-folded).
    o_ref[...] = a2.reshape(N, H, W * Cout)


# ---------------------------------------------------------------------------
# Wrapper-side folding helpers (run once per call; pure XLA ops).
# ---------------------------------------------------------------------------
def _fold_conv_weight(w_hwio, W):
    """(3,3,Ci,Co) -> (3, W*Ci, W*Co) block-banded matrices.

    For each ky:  y[:, w*Co+co] += sum_{kx,ci} x[:, (w+kx-1)*Ci+ci] * w[ky,kx,ci,co]
    with out-of-range W taps dropped, i.e. SAME zero padding along W is folded
    into the matrix, so no column halo is ever materialized.
    """
    KH, KW, Ci, Co = w_hwio.shape
    mats = []
    for ky in range(KH):
        m = jnp.zeros((W * Ci, W * Co), jnp.float32)
        for kx in range(KW):
            shift = jnp.eye(W, W, k=1 - kx, dtype=jnp.float32)  # [p,w]=1 iff p==w+kx-1
            m = m + jnp.kron(shift, w_hwio[ky, kx].astype(jnp.float32))
        mats.append(m)
    return jnp.stack(mats, axis=0)


def _fold_reduce_matrix(W, C):
    """(W*C, W*C) selector: P[w*C+c, w'*C+c'] = [c == c'].

    sum_rows @ P sums over the folded W positions per channel AND broadcasts
    the per-channel result back across all folded lanes in one matmul.
    """
    return jnp.kron(jnp.ones((W, W), jnp.float32), jnp.eye(C, dtype=jnp.float32))


def _pad_tiled_bytes(shape, itemsize=4):
    """Lane/sublane-padded VMEM footprint estimate of an f32 buffer."""
    s = list(shape)
    if len(s) < 2:
        s = [1] * (2 - len(s)) + s
    s[-1] = -(-s[-1] // 128) * 128
    s[-2] = -(-s[-2] // 8) * 8
    n = itemsize
    for d in s:
        n *= int(d)
    return n


# ---------------------------------------------------------------------------
# DoubleConv forward (NCHW in / NCHW out, matching PyTorch).
# ---------------------------------------------------------------------------
def double_conv(x_nchw, params, eps=1e-5):
    N, Cin, H, W = x_nchw.shape
    Cmid = params["w1"].shape[-1]
    Cout = params["w2"].shape[-1]

    # Lane-folded input: NCHW -> NHWC -> (N, H, W*Cin).
    x = jnp.transpose(x_nchw, (0, 2, 3, 1)).astype(jnp.float32)
    x = x.reshape(N, H, W * Cin)

    w1f = _fold_conv_weight(params["w1"], W)            # (3, W*Cin,  W*Cmid)
    w2f = _fold_conv_weight(params["w2"], W)            # (3, W*Cmid, W*Cout)
    p1 = _fold_reduce_matrix(W, Cmid)
    p2 = _fold_reduce_matrix(W, Cout)
    g1 = jnp.tile(params["gamma1"].astype(jnp.float32), W).reshape(1, W * Cmid)
    bt1 = jnp.tile(params["beta1"].astype(jnp.float32), W).reshape(1, W * Cmid)
    g2 = jnp.tile(params["gamma2"].astype(jnp.float32), W).reshape(1, W * Cout)
    bt2 = jnp.tile(params["beta2"].astype(jnp.float32), W).reshape(1, W * Cout)
    # Conv biases (params["b1"], params["b2"]) are intentionally NOT fed to the
    # kernel: with batch-statistics BatchNorm they cancel exactly in (y - mean).

    # ---- generation-aware VMEM gate + explicit scoped-VMEM limit ----
    vmem_est = (
        2 * _pad_tiled_bytes((N, H, W * Cin)) +           # input block (dbl-buf)
        2 * _pad_tiled_bytes((N, H, W * Cout)) +          # output block (dbl-buf)
        2 * _pad_tiled_bytes((3, W * Cin, W * Cmid)) +    # folded w1
        2 * _pad_tiled_bytes((3, W * Cmid, W * Cout)) +   # folded w2
        2 * _pad_tiled_bytes((W * Cmid, W * Cmid)) +      # P1
        2 * _pad_tiled_bytes((W * Cout, W * Cout)) +      # P2
        _pad_tiled_bytes((N, H + 2, W * Cin)) +           # xh1 scratch
        _pad_tiled_bytes((N, H + 2, W * Cmid)) +          # xh2 scratch
        6 * _pad_tiled_bytes((N * H, W * max(Cmid, Cout))))  # live values
    try:
        vmem_cap = int(getattr(pltpu.get_tpu_info(), "vmem_capacity_bytes"))
    except Exception:
        vmem_cap = 64 * 1024 * 1024   # conservative fallback: v7x per-TC VMEM
    budget = int(0.70 * vmem_cap)     # headroom for Mosaic internal scratch
    assert vmem_est <= budget, (
        "activation working set too large for fully fused DoubleConv kernel "
        f"(est {vmem_est >> 20} MiB > budget {budget >> 20} MiB)")
    vmem_limit = int(min(budget,
                         max(vmem_est * 5 // 4 + (8 << 20), 16 << 20)))
    # TODO(synk): for real UNet sizes add a row-tiled variant (grid over H-row
    # tiles with 1-px halo via index_map, a leading "parallel" axis over N for
    # v7x megacore with a two-pass cross-core BN reduction, bf16 MXU operands
    # at >=64 channels, and pl.Buffered(1) on in/out specs while grid is (1,)).

    kernel = functools.partial(
        _double_conv_kernel,
        N=N, H=H, W=W, Cin=Cin, Cmid=Cmid, Cout=Cout, eps=float(eps))

    out_flat = pl.pallas_call(
        kernel,
        out_shape=jax.ShapeDtypeStruct((N, H, W * Cout), jnp.float32),
        grid_spec=pltpu.PrefetchScalarGridSpec(
            num_scalar_prefetch=0,
            grid=(1,),
            in_specs=[
                pl.BlockSpec((N, H, W * Cin), lambda i: (0, 0, 0)),
                pl.BlockSpec((3, W * Cin, W * Cmid), lambda i: (0, 0, 0)),
                pl.BlockSpec((W * Cmid, W * Cmid), lambda i: (0, 0)),
                pl.BlockSpec((1, W * Cmid), lambda i: (0, 0)),
                pl.BlockSpec((1, W * Cmid), lambda i: (0, 0)),
                pl.BlockSpec((3, W * Cmid, W * Cout), lambda i: (0, 0, 0)),
                pl.BlockSpec((W * Cout, W * Cout), lambda i: (0, 0)),
                pl.BlockSpec((1, W * Cout), lambda i: (0, 0)),
                pl.BlockSpec((1, W * Cout), lambda i: (0, 0)),
            ],
            out_specs=pl.BlockSpec((N, H, W * Cout), lambda i: (0, 0, 0)),
            scratch_shapes=[
                pltpu.VMEM((N, H + 2, W * Cin), jnp.float32),    # row-haloed x
                pltpu.VMEM((N, H + 2, W * Cmid), jnp.float32),   # row-haloed a1
            ],
        ),
        compiler_params=pltpu.CompilerParams(
            dimension_semantics=("arbitrary",),
            vmem_limit_bytes=vmem_limit),
    )(x, w1f, p1, g1, bt1, w2f, p2, g2, bt2)

    out = out_flat.reshape(N, H, W, Cout)
    return jnp.transpose(out, (0, 3, 1, 2))                      # NHWC -> NCHW


# ---------------------------------------------------------------------------
# Pure-JAX reference (for correctness check).
# ---------------------------------------------------------------------------
def double_conv_ref(x_nchw, params, eps=1e-5):
    x = jnp.transpose(x_nchw, (0, 2, 3, 1))

    def conv(x, w, b):
        y = lax.conv_general_dilated(
            x, w, window_strides=(1, 1), padding="SAME",
            dimension_numbers=("NHWC", "HWIO", "NHWC"),
            precision=lax.Precision.HIGHEST)
        return y + b

    def bn_relu_ref(y, gamma, beta):
        mean = y.mean(axis=(0, 1, 2))
        var = y.var(axis=(0, 1, 2))
        yhat = (y - mean) / jnp.sqrt(var + eps)
        return jnp.maximum(yhat * gamma + beta, 0.0)

    a1 = bn_relu_ref(conv(x, params["w1"], params["b1"]),
                     params["gamma1"], params["beta1"])
    a2 = bn_relu_ref(conv(a1, params["w2"], params["b2"]),
                     params["gamma2"], params["beta2"])
    return jnp.transpose(a2, (0, 3, 1, 2))


if __name__ == "__main__":
    # Module config: DoubleConv(in_channels=4, out_channels=8) -> mid=8
    N, Cin, H, W = 2, 4, 16, 16
    Cmid, Cout = 8, 8

    key = jax.random.PRNGKey(0)
    ks = jax.random.split(key, 9)
    params = {
        "w1": 0.2 * jax.random.normal(ks[0], (3, 3, Cin, Cmid), jnp.float32),
        "b1": 0.1 * jax.random.normal(ks[1], (Cmid,), jnp.float32),
        "gamma1": 1.0 + 0.1 * jax.random.normal(ks[2], (Cmid,), jnp.float32),
        "beta1": 0.1 * jax.random.normal(ks[3], (Cmid,), jnp.float32),
        "w2": 0.2 * jax.random.normal(ks[4], (3, 3, Cmid, Cout), jnp.float32),
        "b2": 0.1 * jax.random.normal(ks[5], (Cout,), jnp.float32),
        "gamma2": 1.0 + 0.1 * jax.random.normal(ks[6], (Cout,), jnp.float32),
        "beta2": 0.1 * jax.random.normal(ks[7], (Cout,), jnp.float32),
    }
    x = jax.random.normal(ks[8], (N, Cin, H, W), jnp.float32)

    out = jax.block_until_ready(double_conv(x, params))
    ref = jax.block_until_ready(double_conv_ref(x, params))

    assert out.shape == (N, Cout, H, W), out.shape
    assert jnp.allclose(out, ref, atol=1e-4, rtol=1e-4), (
        float(jnp.max(jnp.abs(out - ref))))
    print("KERNEL_OK")
</pallas_src>

<mosaic_0001>
module attributes {stable_mosaic.version = 11 : i64} {
  func.func @_double_conv_kernel(%arg0: i32, %arg1: memref<2x16x64xf32, #tpu.memory_space<vmem>>, %arg2: memref<3x64x128xf32, #tpu.memory_space<vmem>>, %arg3: memref<128x128xf32, #tpu.memory_space<vmem>>, %arg4: memref<1x128xf32, #tpu.memory_space<vmem>>, %arg5: memref<1x128xf32, #tpu.memory_space<vmem>>, %arg6: memref<3x128x128xf32, #tpu.memory_space<vmem>>, %arg7: memref<128x128xf32, #tpu.memory_space<vmem>>, %arg8: memref<1x128xf32, #tpu.memory_space<vmem>>, %arg9: memref<1x128xf32, #tpu.memory_space<vmem>>, %arg10: memref<2x16x128xf32, #tpu.memory_space<vmem>>, %arg11: memref<2x18x64xf32, #tpu.memory_space<vmem>>, %arg12: memref<2x18x128xf32, #tpu.memory_space<vmem>>) attributes {dimension_semantics = [#tpu.dimension_semantics<arbitrary>], iteration_bounds = array<i64: 1>, scalar_prefetch = 0 : i64, scratch_operands = 2 : i64, tpu.core_type = #tpu.core_type<tc>, window_params = [{pipeline_mode = #tpu.pipeline_mode<synchronous>, transform_indices = @transform_0, window_bounds = array<i64: 2, 16, 64>}, {pipeline_mode = #tpu.pipeline_mode<synchronous>, transform_indices = @transform_1, window_bounds = array<i64: 3, 64, 128>}, {pipeline_mode = #tpu.pipeline_mode<synchronous>, transform_indices = @transform_2, window_bounds = array<i64: 128, 128>}, {pipeline_mode = #tpu.pipeline_mode<synchronous>, transform_indices = @transform_3, window_bounds = array<i64: 1, 128>}, {pipeline_mode = #tpu.pipeline_mode<synchronous>, transform_indices = @transform_4, window_bounds = array<i64: 1, 128>}, {pipeline_mode = #tpu.pipeline_mode<synchronous>, transform_indices = @transform_5, window_bounds = array<i64: 3, 128, 128>}, {pipeline_mode = #tpu.pipeline_mode<synchronous>, transform_indices = @transform_6, window_bounds = array<i64: 128, 128>}, {pipeline_mode = #tpu.pipeline_mode<synchronous>, transform_indices = @transform_7, window_bounds = array<i64: 1, 128>}, {pipeline_mode = #tpu.pipeline_mode<synchronous>, transform_indices = @transform_8, window_bounds = array<i64: 1, 128>}, {pipeline_mode = #tpu.pipeline_mode<synchronous>, transform_indices = @transform_9, window_bounds = array<i64: 2, 16, 128>}]} {
    %c0 = arith.constant 0 : index
    %c0_0 = arith.constant 0 : index
    %c0_1 = arith.constant 0 : index
    %0 = vector.load %arg1[%c0, %c0_0, %c0_1] : memref<2x16x64xf32, #tpu.memory_space<vmem>>, vector<2x16x64xf32>
    %cst = arith.constant 0.000000e+00 : f32
    %1 = vector.broadcast %cst : f32 to vector<2x1x64xf32>
    %c0_2 = arith.constant 0 : index
    %c0_3 = arith.constant 0 : index
    %c0_4 = arith.constant 0 : index
    %2 = vector.load %arg11[%c0_2, %c0_3, %c0_4] : memref<2x18x64xf32, #tpu.memory_space<vmem>>, vector<2x1x64xf32>
    tpu.vector_store %arg11[%c0_2, %c0_3, %c0_4], %1 {strides = array<i32>} : memref<2x18x64xf32, #tpu.memory_space<vmem>>, vector<2x1x64xf32>,
    %c0_5 = arith.constant 0 : index
    %c17 = arith.constant 17 : index
    %c0_6 = arith.constant 0 : index
    %3 = vector.load %arg11[%c0_5, %c17, %c0_6] : memref<2x18x64xf32, #tpu.memory_space<vmem>>, vector<2x1x64xf32>
    tpu.vector_store %arg11[%c0_5, %c17, %c0_6], %1 {strides = array<i32>} : memref<2x18x64xf32, #tpu.memory_space<vmem>>, vector<2x1x64xf32>,
    %c0_7 = arith.constant 0 : index
    %c1 = arith.constant 1 : index
    %c0_8 = arith.constant 0 : index
    %4 = vector.load %arg11[%c0_7, %c1, %c0_8] : memref<2x18x64xf32, #tpu.memory_space<vmem>>, vector<2x16x64xf32>
    tpu.vector_store %arg11[%c0_7, %c1, %c0_8], %0 {strides = array<i32>} : memref<2x18x64xf32, #tpu.memory_space<vmem>>, vector<2x16x64xf32>,
    %cst_9 = arith.constant 0.000000e+00 : f32
    %5 = vector.broadcast %cst_9 : f32 to vector<32x128xf32>
    %c0_10 = arith.constant 0 : index
    %c0_11 = arith.constant 0 : index
    %c0_12 = arith.constant 0 : index
    %6 = vector.load %arg11[%c0_10, %c0_11, %c0_12] : memref<2x18x64xf32, #tpu.memory_space<vmem>>, vector<2x16x64xf32>
    %7 = vector.shape_cast %6 : vector<2x16x64xf32> to vector<32x64xf32>
    %c0_13 = arith.constant 0 : index
    %c0_14 = arith.constant 0 : index
    %c0_15 = arith.constant 0 : index
    %8 = vector.load %arg2[%c0_13, %c0_14, %c0_15] : memref<3x64x128xf32, #tpu.memory_space<vmem>>, vector<1x64x128xf32>
    %9 = vector.shape_cast %8 : vector<1x64x128xf32> to vector<64x128xf32>
    %cst_16 = arith.constant dense<0.000000e+00> : vector<32x128xf32>
    %10 = tpu.matmul %7, %9, %cst_16 {dimension_numbers = #tpu.dot_dimension_numbers<[1], [0], [0], [1], [0, 0, 1, 1], [], []>} : vector<32x64xf32>, vector<64x128xf32>, vector<32x128xf32> -> vector<32x128xf32>
    %11 = arith.addf %5, %10 : vector<32x128xf32>
    %c0_17 = arith.constant 0 : index
    %c1_18 = arith.constant 1 : index
    %c0_19 = arith.constant 0 : index
    %12 = vector.load %arg11[%c0_17, %c1_18, %c0_19] : memref<2x18x64xf32, #tpu.memory_space<vmem>>, vector<2x16x64xf32>
    %13 = vector.shape_cast %12 : vector<2x16x64xf32> to vector<32x64xf32>
    %c1_20 = arith.constant 1 : index
    %c0_21 = arith.constant 0 : index
    %c0_22 = arith.constant 0 : index
    %14 = vector.load %arg2[%c1_20, %c0_21, %c0_22] : memref<3x64x128xf32, #tpu.memory_space<vmem>>, vector<1x64x128xf32>
    %15 = vector.shape_cast %14 : vector<1x64x128xf32> to vector<64x128xf32>
    %cst_23 = arith.constant dense<0.000000e+00> : vector<32x128xf32>
    %16 = tpu.matmul %13, %15, %cst_23 {dimension_numbers = #tpu.dot_dimension_numbers<[1], [0], [0], [1], [0, 0, 1, 1], [], []>} : vector<32x64xf32>, vector<64x128xf32>, vector<32x128xf32> -> vector<32x128xf32>
    %17 = arith.addf %11, %16 : vector<32x128xf32>
    %c0_24 = arith.constant 0 : index
    %c2 = arith.constant 2 : index
    %c0_25 = arith.constant 0 : index
    %18 = vector.load %arg11[%c0_24, %c2, %c0_25] : memref<2x18x64xf32, #tpu.memory_space<vmem>>, vector<2x16x64xf32>
    %19 = vector.shape_cast %18 : vector<2x16x64xf32> to vector<32x64xf32>
    %c2_26 = arith.constant 2 : index
    %c0_27 = arith.constant 0 : index
    %c0_28 = arith.constant 0 : index
    %20 = vector.load %arg2[%c2_26, %c0_27, %c0_28] : memref<3x64x128xf32, #tpu.memory_space<vmem>>, vector<1x64x128xf32>
    %21 = vector.shape_cast %20 : vector<1x64x128xf32> to vector<64x128xf32>
    %cst_29 = arith.constant dense<0.000000e+00> : vector<32x128xf32>
    %22 = tpu.matmul %19, %21, %cst_29 {dimension_numbers = #tpu.dot_dimension_numbers<[1], [0], [0], [1], [0, 0, 1, 1], [], []>} : vector<32x64xf32>, vector<64x128xf32>, vector<32x128xf32> -> vector<32x128xf32>
    %23 = arith.addf %17, %22 : vector<32x128xf32>
    %cst_30 = arith.constant dense<0.000000e+00> : vector<128xf32>
    %24 = vector.multi_reduction <add>, %23, %cst_30 [0] : vector<32x128xf32> to vector<128xf32>
    %25 = vector.shape_cast %24 : vector<128xf32> to vector<1x128xf32>
    %c0_31 = arith.constant 0 : index
    %c0_32 = arith.constant 0 : index
    %26 = vector.load %arg3[%c0_31, %c0_32] : memref<128x128xf32, #tpu.memory_space<vmem>>, vector<128x128xf32>
    %cst_33 = arith.constant dense<0.000000e+00> : vector<1x128xf32>
    %27 = tpu.matmul %25, %26, %cst_33 {dimension_numbers = #tpu.dot_dimension_numbers<[1], [0], [0], [1], [0, 0, 1, 1], [], []>} : vector<1x128xf32>, vector<128x128xf32>, vector<1x128xf32> -> vector<1x128xf32>
    %cst_34 = arith.constant 0.001953125 : f32
    %28 = vector.broadcast %cst_34 : f32 to vector<1x128xf32>
    %29 = arith.mulf %27, %28 : vector<1x128xf32>
    %30 = vector.broadcast %29 : vector<1x128xf32> to vector<32x128xf32>
    %31 = arith.subf %23, %30 : vector<32x128xf32>
    %32 = arith.mulf %31, %31 : vector<32x128xf32>
    %cst_35 = arith.constant dense<0.000000e+00> : vector<128xf32>
    %33 = vector.multi_reduction <add>, %32, %cst_35 [0] : vector<32x128xf32> to vector<128xf32>
    %34 = vector.shape_cast %33 : vector<128xf32> to vector<1x128xf32>
    %c0_36 = arith.constant 0 : index
    %c0_37 = arith.constant 0 : index
    %35 = vector.load %arg3[%c0_36, %c0_37] : memref<128x128xf32, #tpu.memory_space<vmem>>, vector<128x128xf32>
    %cst_38 = arith.constant dense<0.000000e+00> : vector<1x128xf32>
    %36 = tpu.matmul %34, %35, %cst_38 {dimension_numbers = #tpu.dot_dimension_numbers<[1], [0], [0], [1], [0, 0, 1, 1], [], []>} : vector<1x128xf32>, vector<128x128xf32>, vector<1x128xf32> -> vector<1x128xf32>
    %cst_39 = arith.constant 0.001953125 : f32
    %37 = vector.broadcast %cst_39 : f32 to vector<1x128xf32>
    %38 = arith.mulf %36, %37 : vector<1x128xf32>
    %c0_40 = arith.constant 0 : index
    %c0_41 = arith.constant 0 : index
    %39 = vector.load %arg4[%c0_40, %c0_41] : memref<1x128xf32, #tpu.memory_space<vmem>>, vector<1x128xf32>
    %cst_42 = arith.constant 9.99999974E-6 : f32
    %40 = vector.broadcast %cst_42 : f32 to vector<1x128xf32>
    %41 = arith.addf %38, %40 : vector<1x128xf32>
    %42 = math.rsqrt %41 : vector<1x128xf32>
    %43 = arith.mulf %39, %42 : vector<1x128xf32>
    %44 = vector.broadcast %43 : vector<1x128xf32> to vector<32x128xf32>
    %45 = arith.mulf %31, %44 : vector<32x128xf32>
    %c0_43 = arith.constant 0 : index
    %c0_44 = arith.constant 0 : index
    %46 = vector.load %arg5[%c0_43, %c0_44] : memref<1x128xf32, #tpu.memory_space<vmem>>, vector<1x128xf32>
    %47 = vector.broadcast %46 : vector<1x128xf32> to vector<32x128xf32>
    %48 = arith.addf %45, %47 : vector<32x128xf32>
    %cst_45 = arith.constant 0.000000e+00 : f32
    %49 = vector.broadcast %cst_45 : f32 to vector<32x128xf32>
    %50 = arith.maximumf %48, %49 : vector<32x128xf32>
    %51 = vector.shape_cast %50 : vector<32x128xf32> to vector<2x16x128xf32>
    %cst_46 = arith.constant 0.000000e+00 : f32
    %52 = vector.broadcast %cst_46 : f32 to vector<2x1x128xf32>
    %c0_47 = arith.constant 0 : index
    %c0_48 = arith.constant 0 : index
    %c0_49 = arith.constant 0 : index
    %53 = vector.load %arg12[%c0_47, %c0_48, %c0_49] : memref<2x18x128xf32, #tpu.memory_space<vmem>>, vector<2x1x128xf32>
    tpu.vector_store %arg12[%c0_47, %c0_48, %c0_49], %52 {strides = array<i32>} : memref<2x18x128xf32, #tpu.memory_space<vmem>>, vector<2x1x128xf32>,
    %c0_50 = arith.constant 0 : index
    %c17_51 = arith.constant 17 : index
    %c0_52 = arith.constant 0 : index
    %54 = vector.load %arg12[%c0_50, %c17_51, %c0_52] : memref<2x18x128xf32, #tpu.memory_space<vmem>>, vector<2x1x128xf32>
    tpu.vector_store %arg12[%c0_50, %c17_51, %c0_52], %52 {strides = array<i32>} : memref<2x18x128xf32, #tpu.memory_space<vmem>>, vector<2x1x128xf32>,
    %c0_53 = arith.constant 0 : index
    %c1_54 = arith.constant 1 : index
    %c0_55 = arith.constant 0 : index
    %55 = vector.load %arg12[%c0_53, %c1_54, %c0_55] : memref<2x18x128xf32, #tpu.memory_space<vmem>>, vector<2x16x128xf32>
    tpu.vector_store %arg12[%c0_53, %c1_54, %c0_55], %51 {strides = array<i32>} : memref<2x18x128xf32, #tpu.memory_space<vmem>>, vector<2x16x128xf32>,
    %cst_56 = arith.constant 0.000000e+00 : f32
    %56 = vector.broadcast %cst_56 : f32 to vector<32x128xf32>
    %c0_57 = arith.constant 0 : index
    %c0_58 = arith.constant 0 : index
    %c0_59 = arith.constant 0 : index
    %57 = vector.load %arg12[%c0_57, %c0_58, %c0_59] : memref<2x18x128xf32, #tpu.memory_space<vmem>>, vector<2x16x128xf32>
    %58 = vector.shape_cast %57 : vector<2x16x128xf32> to vector<32x128xf32>
    %c0_60 = arith.constant 0 : index
    %c0_61 = arith.constant 0 : index
    %c0_62 = arith.constant 0 : index
    %59 = vector.load %arg6[%c0_60, %c0_61, %c0_62] : memref<3x128x128xf32, #tpu.memory_space<vmem>>, vector<1x128x128xf32>
    %60 = vector.shape_cast %59 : vector<1x128x128xf32> to vector<128x128xf32>
    %cst_63 = arith.constant dense<0.000000e+00> : vector<32x128xf32>
    %61 = tpu.matmul %58, %60, %cst_63 {dimension_numbers = #tpu.dot_dimension_numbers<[1], [0], [0], [1], [0, 0, 1, 1], [], []>} : vector<32x128xf32>, vector<128x128xf32>, vector<32x128xf32> -> vector<32x128xf32>
    %62 = arith.addf %56, %61 : vector<32x128xf32>
    %c0_64 = arith.constant 0 : index
    %c1_65 = arith.constant 1 : index
    %c0_66 = arith.constant 0 : index
    %63 = vector.load %arg12[%c0_64, %c1_65, %c0_66] : memref<2x18x128xf32, #tpu.memory_space<vmem>>, vector<2x16x128xf32>
    %64 = vector.shape_cast %63 : vector<2x16x128xf32> to vector<32x128xf32>
    %c1_67 = arith.constant 1 : index
    %c0_68 = arith.constant 0 : index
    %c0_69 = arith.constant 0 : index
    %65 = vector.load %arg6[%c1_67, %c0_68, %c0_69] : memref<3x128x128xf32, #tpu.memory_space<vmem>>, vector<1x128x128xf32>
    %66 = vector.shape_cast %65 : vector<1x128x128xf32> to vector<128x128xf32>
    %cst_70 = arith.constant dense<0.000000e+00> : vector<32x128xf32>
    %67 = tpu.matmul %64, %66, %cst_70 {dimension_numbers = #tpu.dot_dimension_numbers<[1], [0], [0], [1], [0, 0, 1, 1], [], []>} : vector<32x128xf32>, vector<128x128xf32>, vector<32x128xf32> -> vector<32x128xf32>
    %68 = arith.addf %62, %67 : vector<32x128xf32>
    %c0_71 = arith.constant 0 : index
    %c2_72 = arith.constant 2 : index
    %c0_73 = arith.constant 0 : index
    %69 = vector.load %arg12[%c0_71, %c2_72, %c0_73] : memref<2x18x128xf32, #tpu.memory_space<vmem>>, vector<2x16x128xf32>
    %70 = vector.shape_cast %69 : vector<2x16x128xf32> to vector<32x128xf32>
    %c2_74 = arith.constant 2 : index
    %c0_75 = arith.constant 0 : index
    %c0_76 = arith.constant 0 : index
    %71 = vector.load %arg6[%c2_74, %c0_75, %c0_76] : memref<3x128x128xf32, #tpu.memory_space<vmem>>, vector<1x128x128xf32>
    %72 = vector.shape_cast %71 : vector<1x128x128xf32> to vector<128x128xf32>
    %cst_77 = arith.constant dense<0.000000e+00> : vector<32x128xf32>
    %73 = tpu.matmul %70, %72, %cst_77 {dimension_numbers = #tpu.dot_dimension_numbers<[1], [0], [0], [1], [0, 0, 1, 1], [], []>} : vector<32x128xf32>, vector<128x128xf32>, vector<32x128xf32> -> vector<32x128xf32>
    %74 = arith.addf %68, %73 : vector<32x128xf32>
    %cst_78 = arith.constant dense<0.000000e+00> : vector<128xf32>
    %75 = vector.multi_reduction <add>, %74, %cst_78 [0] : vector<32x128xf32> to vector<128xf32>
    %76 = vector.shape_cast %75 : vector<128xf32> to vector<1x128xf32>
    %c0_79 = arith.constant 0 : index
    %c0_80 = arith.constant 0 : index
    %77 = vector.load %arg7[%c0_79, %c0_80] : memref<128x128xf32, #tpu.memory_space<vmem>>, vector<128x128xf32>
    %cst_81 = arith.constant dense<0.000000e+00> : vector<1x128xf32>
    %78 = tpu.matmul %76, %77, %cst_81 {dimension_numbers = #tpu.dot_dimension_numbers<[1], [0], [0], [1], [0, 0, 1, 1], [], []>} : vector<1x128xf32>, vector<128x128xf32>, vector<1x128xf32> -> vector<1x128xf32>
    %cst_82 = arith.constant 0.001953125 : f32
    %79 = vector.broadcast %cst_82 : f32 to vector<1x128xf32>
    %80 = arith.mulf %78, %79 : vector<1x128xf32>
    %81 = vector.broadcast %80 : vector<1x128xf32> to vector<32x128xf32>
    %82 = arith.subf %74, %81 : vector<32x128xf32>
    %83 = arith.mulf %82, %82 : vector<32x128xf32>
    %cst_83 = arith.constant dense<0.000000e+00> : vector<128xf32>
    %84 = vector.multi_reduction <add>, %83, %cst_83 [0] : vector<32x128xf32> to vector<128xf32>
    %85 = vector.shape_cast %84 : vector<128xf32> to vector<1x128xf32>
    %c0_84 = arith.constant 0 : index
    %c0_85 = arith.constant 0 : index
    %86 = vector.load %arg7[%c0_84, %c0_85] : memref<128x128xf32, #tpu.memory_space<vmem>>, vector<128x128xf32>
    %cst_86 = arith.constant dense<0.000000e+00> : vector<1x128xf32>
    %87 = tpu.matmul %85, %86, %cst_86 {dimension_numbers = #tpu.dot_dimension_numbers<[1], [0], [0], [1], [0, 0, 1, 1], [], []>} : vector<1x128xf32>, vector<128x128xf32>, vector<1x128xf32> -> vector<1x128xf32>
    %cst_87 = arith.constant 0.001953125 : f32
    %88 = vector.broadcast %cst_87 : f32 to vector<1x128xf32>
    %89 = arith.mulf %87, %88 : vector<1x128xf32>
    %c0_88 = arith.constant 0 : index
    %c0_89 = arith.constant 0 : index
    %90 = vector.load %arg8[%c0_88, %c0_89] : memref<1x128xf32, #tpu.memory_space<vmem>>, vector<1x128xf32>
    %cst_90 = arith.constant 9.99999974E-6 : f32
    %91 = vector.broadcast %cst_90 : f32 to vector<1x128xf32>
    %92 = arith.addf %89, %91 : vector<1x128xf32>
    %93 = math.rsqrt %92 : vector<1x128xf32>
    %94 = arith.mulf %90, %93 : vector<1x128xf32>
    %95 = vector.broadcast %94 : vector<1x128xf32> to vector<32x128xf32>
    %96 = arith.mulf %82, %95 : vector<32x128xf32>
    %c0_91 = arith.constant 0 : index
    %c0_92 = arith.constant 0 : index
    %97 = vector.load %arg9[%c0_91, %c0_92] : memref<1x128xf32, #tpu.memory_space<vmem>>, vector<1x128xf32>
    %98 = vector.broadcast %97 : vector<1x128xf32> to vector<32x128xf32>
    %99 = arith.addf %96, %98 : vector<32x128xf32>
    %cst_93 = arith.constant 0.000000e+00 : f32
    %100 = vector.broadcast %cst_93 : f32 to vector<32x128xf32>
    %101 = arith.maximumf %99, %100 : vector<32x128xf32>
    %102 = vector.shape_cast %101 : vector<32x128xf32> to vector<2x16x128xf32>
    %c0_94 = arith.constant 0 : index
    %c0_95 = arith.constant 0 : index
    %c0_96 = arith.constant 0 : index
    %103 = vector.load %arg10[%c0_94, %c0_95, %c0_96] : memref<2x16x128xf32, #tpu.memory_space<vmem>>, vector<2x16x128xf32>
    tpu.vector_store %arg10[%c0_94, %c0_95, %c0_96], %102 {strides = array<i32>} : memref<2x16x128xf32, #tpu.memory_space<vmem>>, vector<2x16x128xf32>,
    return
  }
  func.func @transform_0(%arg0: i32) -> (i32, i32, i32) {
    %c0_i32 = arith.constant 0 : i32
    %c0_i32_0 = arith.constant 0 : i32
    %c0_i32_1 = arith.constant 0 : i32
    %c0_i32_2 = arith.constant 0 : i32
    return %c0_i32, %c0_i32_0, %c0_i32_1 : i32, i32, i32
  }
  func.func @transform_1(%arg0: i32) -> (i32, i32, i32) {
    %c0_i32 = arith.constant 0 : i32
    %c0_i32_0 = arith.constant 0 : i32
    %c0_i32_1 = arith.constant 0 : i32
    %c0_i32_2 = arith.constant 0 : i32
    return %c0_i32, %c0_i32_0, %c0_i32_1 : i32, i32, i32
  }
  func.func @transform_2(%arg0: i32) -> (i32, i32) {
    %c0_i32 = arith.constant 0 : i32
    %c0_i32_0 = arith.constant 0 : i32
    %c0_i32_1 = arith.constant 0 : i32
    return %c0_i32, %c0_i32_0 : i32, i32
  }
  func.func @transform_3(%arg0: i32) -> (i32, i32) {
    %c0_i32 = arith.constant 0 : i32
    %c0_i32_0 = arith.constant 0 : i32
    %c0_i32_1 = arith.constant 0 : i32
    return %c0_i32, %c0_i32_0 : i32, i32
  }
  func.func @transform_4(%arg0: i32) -> (i32, i32) {
    %c0_i32 = arith.constant 0 : i32
    %c0_i32_0 = arith.constant 0 : i32
    %c0_i32_1 = arith.constant 0 : i32
    return %c0_i32, %c0_i32_0 : i32, i32
  }
  func.func @transform_5(%arg0: i32) -> (i32, i32, i32) {
    %c0_i32 = arith.constant 0 : i32
    %c0_i32_0 = arith.constant 0 : i32
    %c0_i32_1 = arith.constant 0 : i32
    %c0_i32_2 = arith.constant 0 : i32
    return %c0_i32, %c0_i32_0, %c0_i32_1 : i32, i32, i32
  }
  func.func @transform_6(%arg0: i32) -> (i32, i32) {
    %c0_i32 = arith.constant 0 : i32
    %c0_i32_0 = arith.constant 0 : i32
    %c0_i32_1 = arith.constant 0 : i32
    return %c0_i32, %c0_i32_0 : i32, i32
  }
  func.func @transform_7(%arg0: i32) -> (i32, i32) {
    %c0_i32 = arith.constant 0 : i32
    %c0_i32_0 = arith.constant 0 : i32
    %c0_i32_1 = arith.constant 0 : i32
    return %c0_i32, %c0_i32_0 : i32, i32
  }
  func.func @transform_8(%arg0: i32) -> (i32, i32) {
    %c0_i32 = arith.constant 0 : i32
    %c0_i32_0 = arith.constant 0 : i32
    %c0_i32_1 = arith.constant 0 : i32
    return %c0_i32, %c0_i32_0 : i32, i32
  }
  func.func @transform_9(%arg0: i32) -> (i32, i32, i32) {
    %c0_i32 = arith.constant 0 : i32
    %c0_i32_0 = arith.constant 0 : i32
    %c0_i32_1 = arith.constant 0 : i32
    %c0_i32_2 = arith.constant 0 : i32
    return %c0_i32, %c0_i32_0, %c0_i32_1 : i32, i32, i32
  }
}

</mosaic_0001>

<bundles_post_ra>
// kernel: tpu_custom_call.1
= control target key start
LH: loop header
LB: loop body
LE: loop exit
PB: predicated region body
PF: predicated region fallthrough
CT: control target
= control target key end

     0   :  { %14 = vsyncpa [#allocation5], 0  ;;  %s2104_s0 = inlined_call_operand.hbm [shape: f32[2,16,64], index: 0, kind: input, shape index: {}]   ;;  %s2105_s1 = inlined_call_operand.hbm [shape: f32[3,64,128], index: 1, kind: input, shape index: {}]   ;;  %s2106_s2 = inlined_call_operand.hbm [shape: f32[128,128], index: 2, kind: input, shape index: {}]   ;;  %s2107_s3 = inlined_call_operand.vmem [shape: f32[1,128], index: 3, kind: input, shape index: {}]   ;;  %s2108_s4 = inlined_call_operand.vmem [shape: f32[1,128], index: 4, kind: input, shape index: {}]   ;;  %s2109_s5 = inlined_call_operand.hbm [shape: f32[3,128,128], index: 5, kind: input, shape index: {}]   ;;  %s2110_s6 = inlined_call_operand.hbm [shape: f32[128,128], index: 6, kind: input, shape index: {}]   ;;  %s2111_s7 = inlined_call_operand.vmem [shape: f32[1,128], index: 7, kind: input, shape index: {}]   ;;  %s2112_s8 = inlined_call_operand.vmem [shape: f32[1,128], index: 8, kind: input, shape index: {}]   ;;  %s2113_s9 = inlined_call_operand.hbm [shape: f32[2,16,128], index: 9, kind: output, shape index: {}]  }
   0x1   :  { %15 = vsyncpa [#allocation8], 0 }
   0x2   :  { %16 = vsyncpa [#allocation11], 0 }
   0x3   :  { %17 = vsyncpa [#allocation6], 0  ;;  %s1874_s30 = smov [#allocation7]   ;;  %s1875_s11 = smov [#allocation10]  }
   0x4   :  { %s35_s10 = sshll.u32 %s1874_s30, 4  ;;  %s63_s12 = sshll.u32 %s1875_s11, 4  ;;  %s36_s10 = int_to_ptr.vmem [resolvable:$true] %s35_s10  ;;  %s64_s12 = int_to_ptr.vmem [resolvable:$true] %s63_s12 }
   0x5   :  { %s1754_s13 = scalar_lea.vmem %s36_s10, 3072  ;;  %p1759_p1 = scmp.lt.s32.totalorder %s36_s10, %s36_s10 }
   0x6   :  { %p1755_p0 = scmp.ne.s32.totalorder %s36_s10, %s1754_s13  ;;  %p1760_p2 = scmp.lt.s32.totalorder %s1754_s13, %s1754_s13 }
   0x8   :  { %p1761_p3 = por %p1760_p2, %p1759_p1 }
   0xa   :  { %p1762_p4 = pnand %p1761_p3, %p1755_p0 }
   0xc   :  { %1765 = shalt.err (!%p1762_p4)
}
   0xd   :  { %s1876_s14 = smov 128   ;;  %s1877_s15 = smov 8  }
   0xe   :  { %41 = dma.hbm_to_vmem [thread:$0]  %s2105_s1, 3072, %s36_s10, [#allocation8], %s1876_s14, %s1876_s14, %s1877_s15  }
   0xf   :  { %s1774_s18 = scalar_lea.vmem %s64_s12, 6144  ;;  %p1779_p6 = scmp.lt.s32.totalorder %s64_s12, %s64_s12 }
  0x10   :  { %p1775_p5 = scmp.ne.s32.totalorder %s64_s12, %s1774_s18  ;;  %p1780_p7 = scmp.lt.s32.totalorder %s1774_s18, %s1774_s18 }
  0x12   :  { %p1781_p8 = por %p1780_p7, %p1779_p6 }
  0x14   :  { %p1782_p9 = pnand %p1781_p8, %p1775_p5 }
  0x16   :  { %1785 = shalt.err (!%p1782_p9)
}
  0x17   :  { %69 = dma.hbm_to_vmem [thread:$0]  %s2109_s5, 6144, %s64_s12, [#allocation11], %s1876_s14, %s1876_s14, %s1877_s15  }
  0x18   :  { %s1878_s21 = smov [#allocation4]   ;;  %s1879_s23 = smov [#allocation9]  }
  0x19   :  { %s23_s22 = sshll.u32 %s1878_s21, 4  ;;  %s47_s24 = sshll.u32 %s1879_s23, 4  ;;  %s24_s22 = int_to_ptr.vmem [resolvable:$true] %s23_s22  ;;  %s48_s24 = int_to_ptr.vmem [resolvable:$true] %s47_s24 }
  0x1a   :  { %s1794_s1 = scalar_lea.vmem %s24_s22, 512  ;;  %p1799_p11 = scmp.lt.s32.totalorder %s24_s22, %s24_s22 }
  0x1b   :  { %p1795_p10 = scmp.ne.s32.totalorder %s24_s22, %s1794_s1  ;;  %p1800_p12 = scmp.lt.s32.totalorder %s1794_s1, %s1794_s1 }
  0x1d   :  { %p1801_p13 = por %p1800_p12, %p1799_p11 }
  0x1f   :  { %p1802_p0 = pnand %p1801_p13, %p1795_p10 }
  0x21   :  { %1805 = shalt.err (!%p1802_p0)
}
  0x22   :  { %29 = dma.hbm_to_vmem [thread:$0]  %s2104_s0, 512, %s24_s22, [#allocation5], %s1876_s14, %s1876_s14, %s1877_s15  }
  0x23   :  { %s1814_s5 = scalar_lea.vmem %s48_s24, 2048  ;;  %p1819_p2 = scmp.lt.s32.totalorder %s48_s24, %s48_s24 }
  0x24   :  { %p1815_p1 = scmp.ne.s32.totalorder %s48_s24, %s1814_s5  ;;  %p1820_p3 = scmp.lt.s32.totalorder %s1814_s5, %s1814_s5 }
  0x26   :  { %p1821_p4 = por %p1820_p3, %p1819_p2 }
  0x28   :  { %p1822_p5 = pnand %p1821_p4, %p1815_p1 }
  0x2a   :  { %1825 = shalt.err (!%p1822_p5)
}
  0x2b   :  { %53 = dma.hbm_to_vmem [thread:$0]  %s2106_s2, 2048, %s48_s24, [#allocation8], %s1876_s14, %s1876_s14, %s1877_s15  }
  0x2c   :  { %s1880_s29 = smov [#allocation12]  }
  0x2d   :  { %s75_s30 = sshll.u32 %s1880_s29, 4  ;;  %s76_s30 = int_to_ptr.vmem [resolvable:$true] %s75_s30 }
  0x2e   :  { %s1834_s10 = scalar_lea.vmem %s76_s30, 2048  ;;  %p1839_p7 = scmp.lt.s32.totalorder %s76_s30, %s76_s30 }
  0x2f   :  { %p1835_p6 = scmp.ne.s32.totalorder %s76_s30, %s1834_s10  ;;  %p1840_p8 = scmp.lt.s32.totalorder %s1834_s10, %s1834_s10 }
  0x31   :  { %p1841_p9 = por %p1840_p8, %p1839_p7 }
  0x33   :  { %p1842_p10 = pnand %p1841_p9, %p1835_p6 }
  0x35   :  { %1845 = shalt.err (!%p1842_p10)
}
  0x36   :  { %81 = dma.hbm_to_vmem [thread:$0]  %s2110_s6, 2048, %s76_s30, [#allocation11], %s1876_s14, %s1876_s14, %s1877_s15  }
  0x37   :  { %1866 = dma.done.wait [#allocation5], 512  }
  0x38   :  { %1867 = vsyncadd [#allocation5], 4294966784 }
  0x39   :  { %1868 = dma.done.wait [#allocation8], 5120  }
  0x3a   :  { %1869 = vsyncadd [#allocation8], 4294962176 }
  0x3b   :  { %1870 = dma.done.wait [#allocation11], 8192  }
  0x3c   :  { %1871 = vsyncadd [#allocation11], 4294959104  ;;  %vm105_vm0 = vcmask 516096   ;;  %v1881_v0 = vmov 0.0   ;;  %v139_v1 = vld [vmem:[#allocation7 + $0x78] sm:$0xff]  ;;  %v138_v3 = vld [vmem:[#allocation7 + $0x70] sm:$0xff] }
  0x3d   :  { %106 = vst.msk [vmem:[#allocation2] sm:$0x1] %vm105_vm0, %v1881_v0  ;;  %107 = vst.msk [vmem:[#allocation2 + $0x18] sm:$0x1] %vm105_vm0, %v1881_v0  ;;  %v126_v2 = vld [vmem:[#allocation7 + $0x38] sm:$0xff]  ;;  %1412 = vmatprep.subr.mxu0 %v139_v1  ;;  %v125_v4 = vld [vmem:[#allocation7 + $0x30] sm:$0xff] }
  0x3e   :  { %108 = vst.msk [vmem:[#allocation2 + $0x11] sm:$0x1] %vm105_vm0, %v1881_v0  ;;  %109 = vst.msk [vmem:[#allocation2 + $0x29] sm:$0x1] %vm105_vm0, %v1881_v0  ;;  %1434 = vmatprep.subr.mxu1 %v126_v2  ;;  %1413 = vmatpush3.msra.mxu0 %v139_v1  ;;  %v137_v5 = vld [vmem:[#allocation7 + $0x68] sm:$0xff]  ;;  %vm110_vm1 = vcmask 523264  }
  0x3f   :  { %665 = vst [vmem:[#allocation3] sm:$0x1] %v1881_v0  ;;  %666 = vst [vmem:[#allocation3 + $0x18] sm:$0x1] %v1881_v0  ;;  %1435 = vmatpush3.msra.mxu1 %v126_v2  ;;  %v124_v6 = vld [vmem:[#allocation7 + $0x28] sm:$0xff]  ;;  %1414 = vmatprep.subr.mxu0 %v138_v3  ;;  %v136_v7 = vld [vmem:[#allocation7 + $0x60] sm:$0xff] }
  0x40   :  { %667 = vst [vmem:[#allocation3 + $0x11] sm:$0x1] %v1881_v0  ;;  %668 = vst [vmem:[#allocation3 + $0x29] sm:$0x1] %v1881_v0  ;;  %1436 = vmatprep.subr.mxu1 %v125_v4  ;;  %1415 = vmatpush3.msra.mxu0 %v138_v3  ;;  %v123_v8 = vld [vmem:[#allocation7 + $0x20] sm:$0xff]  ;;  %v102_v10 = vld [vmem:[#allocation4 + $0x8] sm:$0xff] }
  0x41   :  { %1437 = vmatpush3.msra.mxu1 %v125_v4  ;;  %1416 = vmatprep.subr.mxu0 %v137_v5  ;;  %v101_v9 = vld [vmem:[#allocation4] sm:$0xff]  ;;  %v135_v11 = vld [vmem:[#allocation7 + $0x58] sm:$0xff]  ;;  %112 = vst.msk [vmem:[#allocation2 + $0x9] sm:$0xff] %vm110_vm1, %v102_v10  ;;  %v103_v13 = vld [vmem:[#allocation4 + $0x10] sm:$0xff]  ;;  %vm1882_vm2 = vmmov 0   ;;  %s1883_s18 = smov [#allocation13]  }
  0x42   :  { %1438 = vmatprep.subr.mxu1 %v124_v6  ;;  %1417 = vmatpush3.msra.mxu0 %v137_v5  ;;  %v122_v12 = vld [vmem:[#allocation7 + $0x18] sm:$0xff]  ;;  %111 = vst.msk [vmem:[#allocation2 + $0x1] sm:$0xff] %vm110_vm1, %v101_v9  ;;  %v134_v14 = vld [vmem:[#allocation7 + $0x50] sm:$0xff]  ;;  %113 = vst.msk [vmem:[#allocation2 + $0x19] sm:$0xff] %vm110_vm1, %v103_v13  ;;  %s1220_s19 = sshll.u32 %s1883_s18, 4  ;;  %s1221_s19 = int_to_ptr.vmem [resolvable:$true] %s1220_s19 }
  0x43   :  { %1439 = vmatpush3.msra.mxu1 %v124_v6  ;;  %1418 = vmatprep.subr.mxu0 %v136_v7  ;;  %v121_v15 = vld [vmem:[#allocation7 + $0x10] sm:$0xff]  ;;  %v104_v16 = vld [vmem:[#allocation4 + $0x18] sm:$0xff]  ;;  %v133_v17 = vld [vmem:[#allocation7 + $0x48] sm:$0xff]  ;;  %p1851_p12 = scmp.lt.s32.totalorder %s1221_s19, %s1221_s19 }
  0x44   :  { %1440 = vmatprep.subr.mxu1 %v123_v8  ;;  %1419 = vmatpush3.msra.mxu0 %v136_v7  ;;  %114 = vst.msk [vmem:[#allocation2 + $0x21] sm:$0xff] %vm110_vm1, %v104_v16  ;;  %v120_v18 = vld [vmem:[#allocation7 + $0x8] sm:$0xff]  ;;  %v132_v19 = vld [vmem:[#allocation7 + $0x40] sm:$0xff]  ;;  %v346_v25 = vld [vmem:[#allocation7 + $0xb8] sm:$0xff] }
  0x45   :  { %1441 = vmatpush3.msra.mxu1 %v123_v8  ;;  %1420 = vmatprep.subr.mxu0 %v135_v11  ;;  %v119_v20 = vld [vmem:[#allocation7] sm:$0xff]  ;;  %v345_v28 = vld [vmem:[#allocation7 + $0xb0] sm:$0xff]  ;;  %v344_v30 = vld [vmem:[#allocation7 + $0xa8] sm:$0xff] }
  0x46   :  { %1442 = vmatprep.subr.mxu1 %v122_v12  ;;  %1421 = vmatpush3.msra.mxu0 %v135_v11  ;;  %v343_v33 = vld [vmem:[#allocation7 + $0xa0] sm:$0xff]  ;;  %v342_v34 = vld [vmem:[#allocation7 + $0x98] sm:$0xff]  ;;  %v341_v35 = vld [vmem:[#allocation7 + $0x90] sm:$0xff] }
  0x47   :  { %1443 = vmatpush3.msra.mxu1 %v122_v12  ;;  %1422 = vmatprep.subr.mxu0 %v134_v14  ;;  %v340_v36 = vld [vmem:[#allocation7 + $0x88] sm:$0xff]  ;;  %v339_v37 = vld [vmem:[#allocation7 + $0x80] sm:$0xff]  ;;  %v472_v41 = vld [vmem:[#allocation9 + $0x78] sm:$0xff] }
  0x48   :  { %1444 = vmatprep.subr.mxu1 %v121_v15  ;;  %1423 = vmatpush3.msra.mxu0 %v134_v14  ;;  %v128_v23 = vld [vmem:[#allocation2 + $0x9] sm:$0xff]  ;;  %v469_v44 = vld [vmem:[#allocation9 + $0x60] sm:$0xff]  ;;  %v468_v45 = vld [vmem:[#allocation9 + $0x58] sm:$0xff] }
  0x49   :  { %1445 = vmatpush3.msra.mxu1 %v121_v15  ;;  %1424 = vmatprep.subr.mxu0 %v133_v17  ;;  %v127_v21 = vld [vmem:[#allocation2 + $0x1] sm:$0xff]  ;;  %v129_v26 = vld [vmem:[#allocation2 + $0x19] sm:$0xff]  ;;  %v335_v38 = vld [vmem:[#allocation2 + $0xa] sm:$0xff] }
  0x4a   :  { %1446 = vmatprep.subr.mxu1 %v120_v18  ;;  %1425 = vmatpush3.msra.mxu0 %v133_v17  ;;  %v115_v22 = vld [vmem:[#allocation2] sm:$0xff]  ;;  %v116_v24 = vld [vmem:[#allocation2 + $0x8] sm:$0xff]  ;;  %v117_v27 = vld [vmem:[#allocation2 + $0x18] sm:$0xff] }
  0x4b   :  { %1447 = vmatpush3.msra.mxu1 %v120_v18  ;;  %1426 = vmatprep.subr.mxu0 %v132_v19  ;;  %v118_v29 = vld [vmem:[#allocation2 + $0x20] sm:$0xff]  ;;  %v471_v42 = vld [vmem:[#allocation9 + $0x70] sm:$0xff]  ;;  %v470_v43 = vld [vmem:[#allocation9 + $0x68] sm:$0xff] }
  0x4c   :  { %1448 = vmatprep.subr.mxu1 %v119_v20  ;;  %1427 = vmatpush3.msra.mxu0 %v132_v19  ;;  %v130_v31 = vld [vmem:[#allocation2 + $0x21] sm:$0xff]  ;;  %v467_v46 = vld [vmem:[#allocation9 + $0x50] sm:$0xff]  ;;  %v464_v49 = vld [vmem:[#allocation9 + $0x38] sm:$0xff] }
  0x4d   :  { %1428 = vmatprep.mubr.msk.f32.mxu0 %vm110_vm1, %v127_v21  ;;  %1449 = vmatpush3.msra.mxu1 %v119_v20  ;;  %v334_v32 = vld [vmem:[#allocation2 + $0x2] sm:$0xff]  ;;  %v336_v39 = vld [vmem:[#allocation2 + $0x1a] sm:$0xff]  ;;  %v463_v50 = vld [vmem:[#allocation9 + $0x30] sm:$0xff] }
  0x4e   :  { %1450 = vmatprep.mubr.msk.f32.mxu1 %vm110_vm1, %v115_v22  ;;  %1429 = vmatmul.mubr.msk.f32.vlgmr.msra.gmra.mxu0 %vm110_vm1, %v128_v23  ;;  %v337_v40 = vld [vmem:[#allocation2 + $0x22] sm:$0xff]  ;;  %v460_v53 = vld [vmem:[#allocation9 + $0x18] sm:$0xff]  ;;  %v459_v54 = vld [vmem:[#allocation9 + $0x10] sm:$0xff]  ;;  %v544_v23 = vlaneseq }
  0x4f   :  { %1451 = vmatmul.mubr.msk.f32.vlgmr.msra.gmra.mxu1 %vm110_vm1, %v116_v24  ;;  %1456 = vmatprep.subr.mxu0 %v346_v25  ;;  %v466_v47 = vld [vmem:[#allocation9 + $0x48] sm:$0xff]  ;;  %v465_v48 = vld [vmem:[#allocation9 + $0x40] sm:$0xff] }
  0x50   :  { %1431 = vmatprep.mubr.msk.f32.mxu0 %vm110_vm1, %v129_v26  ;;  %1457 = vmatpush3.msra.mxu0 %v346_v25  ;;  %v462_v51 = vld [vmem:[#allocation9 + $0x28] sm:$0xff]  ;;  %v461_v52 = vld [vmem:[#allocation9 + $0x20] sm:$0xff]  ;;  %v545_v24 = vshrl.u32 %v544_v23, 7 }
  0x51   :  { %1453 = vmatprep.mubr.msk.f32.mxu1 %vm110_vm1, %v117_v27  ;;  %1458 = vmatprep.subr.mxu0 %v345_v28  ;;  %v458_v55 = vld [vmem:[#allocation9 + $0x8] sm:$0xff]  ;;  %v457_v56 = vld [vmem:[#allocation9] sm:$0xff] }
  0x52   :  { %1478 = vmatprep.subr.mxu1 %v1881_v0  ;;  %1459 = vmatpush3.msra.mxu0 %v345_v28  ;;  %v2024_v25 = vsub.s32 0, %v545_v24 }
  0x53   :  { %1454 = vmatmul.mubr.msk.f32.gmra.mxu1 %vm110_vm1, %v118_v29  ;;  %1460 = vmatprep.subr.mxu0 %v344_v30 }
  0x54   :  { %1432 = vmatmul.mubr.msk.f32.gmra.mxu0 %vm110_vm1, %v130_v31  ;;  %1479 = vmatpush3.msra.mxu1 %v472_v41 }
  0x55   :  { %1461 = vmatpush3.msra.mxu0 %v344_v30  ;;  %1472 = vmatprep.mubr.msk.f32.mxu0 %vm110_vm1, %v334_v32 }
  0x56   :  { %1462 = vmatprep.subr.mxu0 %v343_v33  ;;  %1480 = vmatprep.subr.mxu1 %v1881_v0 }
  0x57   :  { %1463 = vmatpush3.msra.mxu0 %v343_v33  ;;  %1481 = vmatpush3.msra.mxu1 %v471_v42 }
  0x58   :  { %1464 = vmatprep.subr.mxu0 %v342_v34  ;;  %1482 = vmatprep.subr.mxu1 %v1881_v0 }
  0x59   :  { %1465 = vmatpush3.msra.mxu0 %v342_v34  ;;  %1483 = vmatpush3.msra.mxu1 %v470_v43 }
  0x5a   :  { %1466 = vmatprep.subr.mxu0 %v341_v35  ;;  %1484 = vmatprep.subr.mxu1 %v1881_v0 }
  0x5b   :  { %1467 = vmatpush3.msra.mxu0 %v341_v35  ;;  %1485 = vmatpush3.msra.mxu1 %v469_v44 }
  0x5c   :  { %1468 = vmatprep.subr.mxu0 %v340_v36  ;;  %1486 = vmatprep.subr.mxu1 %v1881_v0 }
  0x5d   :  { %1469 = vmatpush3.msra.mxu0 %v340_v36  ;;  %1487 = vmatpush3.msra.mxu1 %v468_v45 }
  0x5e   :  { %1470 = vmatprep.subr.mxu0 %v339_v37  ;;  %1488 = vmatprep.subr.mxu1 %v1881_v0 }
  0x5f   :  { %1471 = vmatpush3.msra.mxu0 %v339_v37  ;;  %1489 = vmatpush3.msra.mxu1 %v467_v46 }
  0x60   :  { %1473 = vmatmul.mubr.msk.f32.vlgmr.msra.gmra.mxu0 %vm110_vm1, %v335_v38  ;;  %1513 = vmatprep.subr.mxu0 %v1881_v0 }
  0x61   :  { %1475 = vmatprep.mubr.msk.f32.mxu0 %vm110_vm1, %v336_v39  ;;  %1514 = vmatpush3.msra.mxu0 %v472_v41 }
  0x62   :  { %1515 = vmatprep.subr.mxu0 %v1881_v0  ;;  %1490 = vmatprep.subr.mxu1 %v1881_v0 }
  0x63   :  { %1516 = vmatpush3.msra.mxu0 %v471_v42  ;;  %1491 = vmatpush3.msra.mxu1 %v466_v47 }
  0x64   :  { %1476 = vmatmul.mubr.msk.f32.gmra.mxu0 %vm110_vm1, %v337_v40  ;;  %1517 = vmatprep.subr.mxu0 %v1881_v0 }
  0x65   :  { %1518 = vmatpush3.msra.mxu0 %v470_v43  ;;  %1492 = vmatprep.subr.mxu1 %v1881_v0 }
  0x66   :  { %1519 = vmatprep.subr.mxu0 %v1881_v0  ;;  %1493 = vmatpush3.msra.mxu1 %v465_v48 }
  0x67   :  { %1520 = vmatpush3.msra.mxu0 %v469_v44  ;;  %1494 = vmatprep.subr.mxu1 %v1881_v0 }
  0x68   :  { %1521 = vmatprep.subr.mxu0 %v1881_v0  ;;  %1495 = vmatpush3.msra.mxu1 %v464_v49 }
  0x69   :  { %1522 = vmatpush3.msra.mxu0 %v468_v45  ;;  %1496 = vmatprep.subr.mxu1 %v1881_v0 }
  0x6a   :  { %1523 = vmatprep.subr.mxu0 %v1881_v0  ;;  %1497 = vmatpush3.msra.mxu1 %v463_v50 }
  0x6b   :  { %1524 = vmatpush3.msra.mxu0 %v467_v46  ;;  %1498 = vmatprep.subr.mxu1 %v1881_v0 }
  0x6c   :  { %1525 = vmatprep.subr.mxu0 %v1881_v0  ;;  %1499 = vmatpush3.msra.mxu1 %v462_v51 }
  0x6d   :  { %1526 = vmatpush3.msra.mxu0 %v466_v47  ;;  %1500 = vmatprep.subr.mxu1 %v1881_v0  ;;  %v713_v47 = vld [vmem:[#allocation10 + $0xf8] sm:$0xff] }
  0x6e   :  { %1527 = vmatprep.subr.mxu0 %v1881_v0  ;;  %1501 = vmatpush3.msra.mxu1 %v461_v52 }
  0x6f   :  { %1528 = vmatpush3.msra.mxu0 %v465_v48  ;;  %1502 = vmatprep.subr.mxu1 %v1881_v0  ;;  %v712_v48 = vld [vmem:[#allocation10 + $0xf0] sm:$0xff] }
  0x70   :  { %1529 = vmatprep.subr.mxu0 %v1881_v0  ;;  %1503 = vmatpush3.msra.mxu1 %v460_v53 }
  0x71   :  { %1530 = vmatpush3.msra.mxu0 %v464_v49  ;;  %1504 = vmatprep.subr.mxu1 %v1881_v0  ;;  %v711_v49 = vld [vmem:[#allocation10 + $0xe8] sm:$0xff] }
  0x72   :  { %1531 = vmatprep.subr.mxu0 %v1881_v0  ;;  %1505 = vmatpush3.msra.mxu1 %v459_v54 }
  0x73   :  { %1532 = vmatpush3.msra.mxu0 %v463_v50  ;;  %1506 = vmatprep.subr.mxu1 %v1881_v0  ;;  %v710_v50 = vld [vmem:[#allocation10 + $0xe0] sm:$0xff] }
  0x74   :  { %1533 = vmatprep.subr.mxu0 %v1881_v0  ;;  %1507 = vmatpush3.msra.mxu1 %v458_v55 }
  0x75   :  { %1534 = vmatpush3.msra.mxu0 %v462_v51  ;;  %1508 = vmatprep.subr.mxu1 %v1881_v0  ;;  %v709_v51 = vld [vmem:[#allocation10 + $0xd8] sm:$0xff] }
  0x76   :  { %1535 = vmatprep.subr.mxu0 %v1881_v0  ;;  %1509 = vmatpush3.msra.mxu1 %v457_v56 }
  0x77   :  { %1536 = vmatpush3.msra.mxu0 %v461_v52  ;;  %1510 = vmatprep.mubr.msk.f32.mxu1 %vm1882_vm2, %v1881_v0  ;;  %v692_v52 = vld [vmem:[#allocation10 + $0x78] sm:$0xff] }
  0x78   :  { %1537 = vmatprep.subr.mxu0 %v1881_v0  ;;  %1545 = vmatprep.mubr.msk.f32.mxu0 %vm1882_vm2, %v1881_v0 }
  0x79   :  { %1538 = vmatpush3.msra.mxu0 %v460_v53  ;;  %1548 = vmatprep.subr.mxu1 %v713_v47  ;;  %v708_v53 = vld [vmem:[#allocation10 + $0xd0] sm:$0xff] }
  0x7a   :  { %1539 = vmatprep.subr.mxu0 %v1881_v0 }
  0x7b   :  { %1540 = vmatpush3.msra.mxu0 %v459_v54  ;;  %v691_v54 = vld [vmem:[#allocation10 + $0x70] sm:$0xff] }
  0x7c   :  { %1541 = vmatprep.subr.mxu0 %v1881_v0 }
  0x7d   :  { %1542 = vmatpush3.msra.mxu0 %v458_v55  ;;  %v707_v55 = vld [vmem:[#allocation10 + $0xc8] sm:$0xff] }
  0x7e   :  { %1543 = vmatprep.subr.mxu0 %v1881_v0 }
  0x7f   :  { %1544 = vmatpush3.msra.mxu0 %v457_v56  ;;  %v690_v56 = vld [vmem:[#allocation10 + $0x68] sm:$0xff] }
  0x80   :  { %1586 = vmatprep.subr.mxu0 %v692_v52 }
 0x10e   :  { %v1430_v57 = vpop.f32.mrf.mxu0 }
 0x10f   :  { %v1452_v58 = vpop.f32.mrf.mxu1 }
 0x110   :  { %v218_v59 = vpop.f32.mrf.mxu0  ;;  %v321_v5 = vadd.f32 %v1452_v58, %v1430_v57  ;;  %v706_v57 = vld [vmem:[#allocation10 + $0xc0] sm:$0xff] }
 0x111   :  { %v315_v61 = vpop.f32.mrf.mxu1  ;;  %v689_v58 = vld [vmem:[#allocation10 + $0x60] sm:$0xff] }
 0x112   :  { %v316_v2 = vadd.f32 %v315_v61, %v218_v59  ;;  %v705_v59 = vld [vmem:[#allocation10 + $0xb8] sm:$0xff]  ;;  %v704_v61 = vld [vmem:[#allocation10 + $0xb0] sm:$0xff] }
 0x113   :  { %v1455_v62 = vpop.f32.mrf.mxu1 }
 0x114   :  { %v1433_v60 = vpop.f32.mrf.mxu0 }
 0x115   :  { %v325_v3 = vpop.f32.mrf.mxu1  ;;  %v331_v11 = vadd.f32 %v1455_v62, %v1433_v60  ;;  %v688_v60 = vld [vmem:[#allocation10 + $0x58] sm:$0xff]  ;;  %v687_v62 = vld [vmem:[#allocation10 + $0x50] sm:$0xff] }
 0x116   :  { %v228_v63 = vpop.f32.mrf.mxu0 }
 0x117   :  { %v326_v8 = vadd.f32 %v325_v3, %v228_v63  ;;  %v703_v63 = vld [vmem:[#allocation10 + $0xa8] sm:$0xff]  ;;  %v685_v3 = vld [vmem:[#allocation10 + $0x40] sm:$0xff] }
 0x120   :  { %v1474_v1 = vpop.f32.mrf.mxu0 }
 0x121   :  { %v445_v9 = vadd.f32 %v1474_v1, %v321_v5  ;;  %v686_v1 = vld [vmem:[#allocation10 + $0x48] sm:$0xff]  ;;  %v684_v5 = vld [vmem:[#allocation10 + $0x38] sm:$0xff] }
 0x122   :  { %v425_v4 = vpop.f32.mrf.mxu0 }
 0x123   :  { %v444_v6 = vadd.f32 %v425_v4, %v316_v2  ;;  %v702_v2 = vld [vmem:[#allocation10 + $0xa0] sm:$0xff]  ;;  %v701_v4 = vld [vmem:[#allocation10 + $0x98] sm:$0xff] }
 0x124   :  { %v1477_v7 = vpop.f32.mrf.mxu0 }
 0x125   :  { %v448_v12 = vadd.f32 %v445_v9, %v444_v6  ;;  %v447_v14 = vadd.f32 %v1477_v7, %v331_v11  ;;  %v683_v7 = vld [vmem:[#allocation10 + $0x30] sm:$0xff]  ;;  %v681_v11 = vld [vmem:[#allocation10 + $0x20] sm:$0xff] }
 0x126   :  { %v435_v10 = vpop.f32.mrf.mxu0 }
 0x127   :  { %v446_v13 = vadd.f32 %v435_v10, %v326_v8  ;;  %v699_v8 = vld [vmem:[#allocation10 + $0x88] sm:$0xff]  ;;  %v698_v10 = vld [vmem:[#allocation10 + $0x80] sm:$0xff] }
 0x129   :  { %v449_v15 = vadd.f32 %v448_v12, %v446_v13  ;;  %v904_v12 = vld [vmem:[#allocation10 + $0x178] sm:$0xff] }
 0x12b   :  { %v450_v16 = vadd.f32 %v449_v15, %v447_v14  ;;  %v678_v15 = vld [vmem:[#allocation10 + $0x8] sm:$0xff] }
 0x12d   :  { %v451_v17 = vrot.slane %v450_v16, 4 }
 0x12f   :  { %v452_v18 = vadd.f32 %v451_v17, %v450_v16  ;;  %v677_v16 = vld [vmem:[#allocation10] sm:$0xff] }
 0x131   :  { %v453_v19 = vrot.slane %v452_v18, 2 }
 0x133   :  { %v454_v20 = vadd.f32 %v453_v19, %v452_v18 }
 0x135   :  { %v455_v21 = vrot.slane %v454_v20, 1 }
 0x137   :  { %v456_v22 = vadd.f32 %v455_v21, %v454_v20  ;;  %v636_v21 = vld [vmem:[%s2107_s3] sm:$0x1] }
 0x139   :  { %1511 = vmatmul.mubr.f32.vlgmr.msra.gmra.mxu1 %v456_v22 }
 0x13a   :  { %1549 = vmatpush3.msra.mxu1 %v713_v47  ;;  %v899_v47 = vld [vmem:[#allocation10 + $0x150] sm:$0xff] }
 0x13b   :  { %1550 = vmatprep.subr.mxu1 %v712_v48 }
 0x13c   :  { %1551 = vmatpush3.msra.mxu1 %v712_v48  ;;  %v898_v48 = vld [vmem:[#allocation10 + $0x148] sm:$0xff] }
 0x13d   :  { %1552 = vmatprep.subr.mxu1 %v711_v49 }
 0x13e   :  { %1553 = vmatpush3.msra.mxu1 %v711_v49 }
 0x13f   :  { %1554 = vmatprep.subr.mxu1 %v710_v50 }
 0x140   :  { %1555 = vmatpush3.msra.mxu1 %v710_v50  ;;  %v897_v50 = vld [vmem:[#allocation10 + $0x140] sm:$0xff] }
 0x141   :  { %1556 = vmatprep.subr.mxu1 %v709_v51 }
 0x142   :  { %1557 = vmatpush3.msra.mxu1 %v709_v51  ;;  %v896_v51 = vld [vmem:[#allocation10 + $0x138] sm:$0xff] }
 0x143   :  { %1558 = vmatprep.subr.mxu1 %v708_v53 }
 0x144   :  { %1559 = vmatpush3.msra.mxu1 %v708_v53  ;;  %v894_v53 = vld [vmem:[#allocation10 + $0x128] sm:$0xff] }
 0x145   :  { %1560 = vmatprep.subr.mxu1 %v707_v55 }
 0x146   :  { %1561 = vmatpush3.msra.mxu1 %v707_v55  ;;  %v892_v55 = vld [vmem:[#allocation10 + $0x118] sm:$0xff] }
 0x147   :  { %1562 = vmatprep.subr.mxu1 %v706_v57 }
 0x148   :  { %1563 = vmatpush3.msra.mxu1 %v706_v57  ;;  %v890_v57 = vld [vmem:[#allocation10 + $0x108] sm:$0xff] }
 0x149   :  { %1564 = vmatprep.subr.mxu1 %v705_v59 }
 0x14a   :  { %1565 = vmatpush3.msra.mxu1 %v705_v59 }
 0x14b   :  { %1566 = vmatprep.subr.mxu1 %v704_v61 }
 0x14c   :  { %1567 = vmatpush3.msra.mxu1 %v704_v61 }
 0x14d   :  { %1568 = vmatprep.subr.mxu1 %v703_v63 }
 0x14e   :  { %1569 = vmatpush3.msra.mxu1 %v703_v63  ;;  %v1017_v63 = vld [vmem:[#allocation12 + $0x70] sm:$0xff] }
 0x14f   :  { %1570 = vmatprep.subr.mxu1 %v702_v2 }
 0x150   :  { %1571 = vmatpush3.msra.mxu1 %v702_v2  ;;  %v1015_v2 = vld [vmem:[#allocation12 + $0x60] sm:$0xff] }
 0x151   :  { %1572 = vmatprep.subr.mxu1 %v701_v4 }
 0x152   :  { %1573 = vmatpush3.msra.mxu1 %v701_v4  ;;  %v1013_v4 = vld [vmem:[#allocation12 + $0x50] sm:$0xff] }
 0x1f9   :  { %v539_v26 = vpop.f32.mrf.mxu1 }
 0x1fa   :  { %v543_v27 = vmul.f32 0.001953125, %v539_v26  ;;  %v1246_v26 = vld [vmem:[%s2108_s4] ss:$0 sm:$0xff] }
 0x1fb   :  { %v1512_v28 = vpop.f32.mrf.mxu1 }
 0x1fc   :  { %v547_v29 = vrot.slane %v543_v27, %v2024_v25 }
 0x1fe   :  { %v2027_v30 = vsub.f32 %v444_v6, %v547_v29  ;;  %v2029_v31 = vsub.f32 %v445_v9, %v547_v29  ;;  %v2031_v32 = vsub.f32 %v446_v13, %v547_v29  ;;  %v2033_v33 = vsub.f32 %v447_v14, %v547_v29  ;;  %v700_v6 = vld [vmem:[#allocation10 + $0x90] sm:$0xff]  ;;  %v682_v9 = vld [vmem:[#allocation10 + $0x28] sm:$0xff]  ;;  %v680_v13 = vld [vmem:[#allocation10 + $0x18] sm:$0xff] }
 0x1ff   :  { %1574 = vmatprep.subr.mxu1 %v700_v6  ;;  %v679_v14 = vld [vmem:[#allocation10 + $0x10] sm:$0xff] }
 0x200   :  { %v552_v34 = vmul.f32 %v2027_v30, %v2027_v30  ;;  %v553_v35 = vmul.f32 %v2029_v31, %v2029_v31  ;;  %v554_v36 = vmul.f32 %v2031_v32, %v2031_v32  ;;  %v555_v38 = vmul.f32 %v2033_v33, %v2033_v33  ;;  %1575 = vmatpush3.msra.mxu1 %v700_v6  ;;  %v1011_v6 = vld [vmem:[#allocation12 + $0x40] sm:$0xff] }
 0x201   :  { %1576 = vmatprep.subr.mxu1 %v699_v8 }
 0x202   :  { %v556_v37 = vadd.f32 %v553_v35, %v552_v34  ;;  %1577 = vmatpush3.msra.mxu1 %v699_v8  ;;  %v1009_v8 = vld [vmem:[#allocation12 + $0x30] sm:$0xff] }
 0x203   :  { %1578 = vmatprep.subr.mxu1 %v698_v10 }
 0x204   :  { %v557_v39 = vadd.f32 %v556_v37, %v554_v36  ;;  %1579 = vmatpush3.msra.mxu1 %v698_v10  ;;  %v1007_v10 = vld [vmem:[#allocation12 + $0x20] sm:$0xff] }
 0x205   :  { %1624 = vmatprep.subr.mxu1 %v904_v12 }
 0x206   :  { %v558_v40 = vadd.f32 %v557_v39, %v555_v38 }
 0x208   :  { %v559_v41 = vrot.slane %v558_v40, 4 }
 0x20a   :  { %v560_v42 = vadd.f32 %v559_v41, %v558_v40 }
 0x20c   :  { %v561_v43 = vrot.slane %v560_v42, 2 }
 0x20e   :  { %v562_v44 = vadd.f32 %v561_v43, %v560_v42 }
 0x210   :  { %v563_v45 = vrot.slane %v562_v44, 1 }
 0x212   :  { %v564_v46 = vadd.f32 %v563_v45, %v562_v44  ;;  %v900_v44 = vld [vmem:[#allocation10 + $0x158] sm:$0xff] }
 0x214   :  { %1546 = vmatmul.mubr.f32.vlgmr.msra.gmra.mxu0 %v564_v46 }
 0x215   :  { %1587 = vmatpush3.msra.mxu0 %v692_v52  ;;  %v895_v52 = vld [vmem:[#allocation10 + $0x130] sm:$0xff] }
 0x216   :  { %1588 = vmatprep.subr.mxu0 %v691_v54 }
 0x217   :  { %1589 = vmatpush3.msra.mxu0 %v691_v54  ;;  %v893_v54 = vld [vmem:[#allocation10 + $0x120] sm:$0xff] }
 0x218   :  { %1590 = vmatprep.subr.mxu0 %v690_v56 }
 0x219   :  { %1591 = vmatpush3.msra.mxu0 %v690_v56  ;;  %v891_v56 = vld [vmem:[#allocation10 + $0x110] sm:$0xff] }
 0x21a   :  { %1592 = vmatprep.subr.mxu0 %v689_v58 }
 0x21b   :  { %1593 = vmatpush3.msra.mxu0 %v689_v58  ;;  %v889_v58 = vld [vmem:[#allocation10 + $0x100] sm:$0xff] }
 0x21c   :  { %1594 = vmatprep.subr.mxu0 %v688_v60 }
 0x21d   :  { %1595 = vmatpush3.msra.mxu0 %v688_v60 }
 0x21e   :  { %1596 = vmatprep.subr.mxu0 %v687_v62 }
 0x21f   :  { %1597 = vmatpush3.msra.mxu0 %v687_v62  ;;  %v1018_v62 = vld [vmem:[#allocation12 + $0x78] sm:$0xff] }
 0x220   :  { %1598 = vmatprep.subr.mxu0 %v686_v1 }
 0x221   :  { %1599 = vmatpush3.msra.mxu0 %v686_v1  ;;  %v1016_v1 = vld [vmem:[#allocation12 + $0x68] sm:$0xff] }
 0x222   :  { %1600 = vmatprep.subr.mxu0 %v685_v3 }
 0x223   :  { %1601 = vmatpush3.msra.mxu0 %v685_v3  ;;  %v1014_v3 = vld [vmem:[#allocation12 + $0x58] sm:$0xff] }
 0x224   :  { %1602 = vmatprep.subr.mxu0 %v684_v5 }
 0x225   :  { %1603 = vmatpush3.msra.mxu0 %v684_v5  ;;  %v1012_v5 = vld [vmem:[#allocation12 + $0x48] sm:$0xff] }
 0x226   :  { %1604 = vmatprep.subr.mxu0 %v683_v7 }
 0x227   :  { %1605 = vmatpush3.msra.mxu0 %v683_v7  ;;  %v1010_v7 = vld [vmem:[#allocation12 + $0x38] sm:$0xff] }
 0x228   :  { %1606 = vmatprep.subr.mxu0 %v682_v9 }
 0x229   :  { %1607 = vmatpush3.msra.mxu0 %v682_v9  ;;  %v1008_v9 = vld [vmem:[#allocation12 + $0x28] sm:$0xff] }
 0x22a   :  { %1608 = vmatprep.subr.mxu0 %v681_v11 }
 0x22b   :  { %1609 = vmatpush3.msra.mxu0 %v681_v11  ;;  %v1006_v11 = vld [vmem:[#allocation12 + $0x18] sm:$0xff] }
 0x22c   :  { %1610 = vmatprep.subr.mxu0 %v680_v13 }
 0x22d   :  { %1611 = vmatpush3.msra.mxu0 %v680_v13  ;;  %v1004_v13 = vld [vmem:[#allocation12 + $0x8] sm:$0xff] }
 0x22e   :  { %1612 = vmatprep.subr.mxu0 %v679_v14 }
 0x22f   :  { %1613 = vmatpush3.msra.mxu0 %v679_v14  ;;  %v1003_v14 = vld [vmem:[#allocation12] sm:$0xff] }
 0x230   :  { %1614 = vmatprep.subr.mxu0 %v678_v15 }
 0x231   :  { %1615 = vmatpush3.msra.mxu0 %v678_v15 }
 0x232   :  { %1616 = vmatprep.subr.mxu0 %v677_v16 }
 0x233   :  { %1617 = vmatpush3.msra.mxu0 %v677_v16 }
 0x234   :  { %1662 = vmatprep.subr.mxu0 %v1881_v0 }
 0x2d4   :  { %v631_v17 = vpop.f32.mrf.mxu0 }
 0x2d5   :  { %v635_v18 = vmul.f32 0.001953125, %v631_v17 }
 0x2d6   :  { %v1547_v19 = vpop.f32.mrf.mxu0 }
 0x2d7   :  { %v637_v20 = vadd.f32 1e-05, %v635_v18 }
 0x2d9   :  { %1742 = vrsqrt.f32 %v637_v20 }
 0x2e6   :  { %v1743_v22 = vpop.eup %1742 }
 0x2e7   :  { %v639_v23 = vmul.f32 %v1743_v22, %v636_v21 }
 0x2e9   :  { %v644_v24 = vrot.slane %v639_v23, %v2024_v25 }
 0x2eb   :  { %v646_v27 = vmul.f32 %v644_v24, %v2027_v30  ;;  %v647_v28 = vmul.f32 %v644_v24, %v2029_v31  ;;  %v648_v29 = vmul.f32 %v644_v24, %v2031_v32  ;;  %v649_v34 = vmul.f32 %v644_v24, %v2033_v33  ;;  %v903_v30 = vld [vmem:[#allocation10 + $0x170] sm:$0xff]  ;;  %v902_v31 = vld [vmem:[#allocation10 + $0x168] sm:$0xff]  ;;  %v901_v32 = vld [vmem:[#allocation10 + $0x160] sm:$0xff] }
 0x2ed   :  { %v657_v35 = vadd.f32 %v1246_v26, %v646_v27  ;;  %v658_v36 = vadd.f32 %v1246_v26, %v647_v28  ;;  %v659_v37 = vadd.f32 %v1246_v26, %v648_v29  ;;  %v660_v38 = vadd.f32 %v1246_v26, %v649_v34 }
 0x2ef   :  { %v661_v39 = vmax.f32 %v657_v35, 0.0  ;;  %v662_v40 = vmax.f32 %v658_v36, 0.0  ;;  %v663_v41 = vmax.f32 %v659_v37, 0.0  ;;  %v664_v42 = vmax.f32 %v660_v38, 0.0 }
 0x2f1   :  { %669 = vst [vmem:[#allocation3 + $0x1] sm:$0xff] %v661_v39  ;;  %670 = vst [vmem:[#allocation3 + $0x9] sm:$0xff] %v662_v40  ;;  %1580 = vmatprep.mubr.f32.mxu1 %v661_v39 }
 0x2f2   :  { %671 = vst [vmem:[#allocation3 + $0x19] sm:$0xff] %v663_v41  ;;  %672 = vst [vmem:[#allocation3 + $0x21] sm:$0xff] %v664_v42  ;;  %1581 = vmatmul.mubr.f32.vlgmr.msra.gmra.mxu1 %v662_v40 }
 0x2f3   :  { %1625 = vmatpush3.msra.mxu1 %v904_v12  ;;  %1583 = vmatprep.mubr.f32.mxu1 %v663_v41  ;;  %v1005_v12 = vld [vmem:[#allocation12 + $0x10] sm:$0xff] }
 0x2f4   :  { %1626 = vmatprep.subr.mxu1 %v903_v30 }
 0x2f5   :  { %1627 = vmatpush3.msra.mxu1 %v903_v30 }
 0x2f6   :  { %1628 = vmatprep.subr.mxu1 %v902_v31  ;;  %1584 = vmatmul.mubr.f32.gmra.mxu1 %v664_v42 }
 0x2f7   :  { %1629 = vmatpush3.msra.mxu1 %v902_v31 }
 0x2f8   :  { %v673_v33 = vld [vmem:[#allocation3] sm:$0xff]  ;;  %v674_v43 = vld [vmem:[#allocation3 + $0x8] sm:$0xff]  ;;  %1630 = vmatprep.subr.mxu1 %v901_v32 }
 0x2f9   :  { %1618 = vmatprep.mubr.f32.mxu0 %v673_v33  ;;  %v884_v45 = vld [vmem:[#allocation3 + $0x2] sm:$0xff]  ;;  %1631 = vmatpush3.msra.mxu1 %v901_v32  ;;  %v675_v46 = vld [vmem:[#allocation3 + $0x18] sm:$0xff]  ;;  %v885_v59 = vld [vmem:[#allocation3 + $0xa] sm:$0xff] }
 0x2fa   :  { %1619 = vmatmul.mubr.f32.vlgmr.msra.gmra.mxu0 %v674_v43  ;;  %1656 = vmatprep.mubr.f32.mxu1 %v884_v45  ;;  %v676_v49 = vld [vmem:[#allocation3 + $0x20] sm:$0xff] }
 0x2fb   :  { %1621 = vmatprep.mubr.f32.mxu0 %v675_v46  ;;  %1632 = vmatprep.subr.mxu1 %v900_v44  ;;  %v886_v60 = vld [vmem:[#allocation3 + $0x1a] sm:$0xff]  ;;  %v887_v61 = vld [vmem:[#allocation3 + $0x22] sm:$0xff] }
 0x2fc   :  { %1633 = vmatpush3.msra.mxu1 %v900_v44  ;;  %1663 = vmatpush3.msra.mxu0 %v1018_v62 }
 0x2fd   :  { %1634 = vmatprep.subr.mxu1 %v899_v47  ;;  %1664 = vmatprep.subr.mxu0 %v1881_v0 }
 0x2fe   :  { %1622 = vmatmul.mubr.f32.gmra.mxu0 %v676_v49  ;;  %1635 = vmatpush3.msra.mxu1 %v899_v47 }
 0x2ff   :  { %1636 = vmatprep.subr.mxu1 %v898_v48  ;;  %1694 = vmatprep.mubr.msk.f32.mxu0 %vm1882_vm2, %v1881_v0 }
 0x300   :  { %1637 = vmatpush3.msra.mxu1 %v898_v48  ;;  %1665 = vmatpush3.msra.mxu0 %v1017_v63 }
 0x301   :  { %1638 = vmatprep.subr.mxu1 %v897_v50  ;;  %1666 = vmatprep.subr.mxu0 %v1881_v0 }
 0x302   :  { %1639 = vmatpush3.msra.mxu1 %v897_v50  ;;  %1667 = vmatpush3.msra.mxu0 %v1016_v1 }
 0x303   :  { %1640 = vmatprep.subr.mxu1 %v896_v51  ;;  %1668 = vmatprep.subr.mxu0 %v1881_v0 }
 0x304   :  { %1641 = vmatpush3.msra.mxu1 %v896_v51  ;;  %1669 = vmatpush3.msra.mxu0 %v1015_v2 }
 0x305   :  { %1642 = vmatprep.subr.mxu1 %v895_v52  ;;  %1670 = vmatprep.subr.mxu0 %v1881_v0 }
 0x306   :  { %1643 = vmatpush3.msra.mxu1 %v895_v52  ;;  %1671 = vmatpush3.msra.mxu0 %v1014_v3 }
 0x307   :  { %1644 = vmatprep.subr.mxu1 %v894_v53  ;;  %1672 = vmatprep.subr.mxu0 %v1881_v0 }
 0x308   :  { %1645 = vmatpush3.msra.mxu1 %v894_v53  ;;  %1673 = vmatpush3.msra.mxu0 %v1013_v4 }
 0x309   :  { %1646 = vmatprep.subr.mxu1 %v893_v54  ;;  %1674 = vmatprep.subr.mxu0 %v1881_v0 }
 0x30a   :  { %1647 = vmatpush3.msra.mxu1 %v893_v54  ;;  %1675 = vmatpush3.msra.mxu0 %v1012_v5 }
 0x30b   :  { %1648 = vmatprep.subr.mxu1 %v892_v55  ;;  %1676 = vmatprep.subr.mxu0 %v1881_v0 }
 0x30c   :  { %1649 = vmatpush3.msra.mxu1 %v892_v55  ;;  %1677 = vmatpush3.msra.mxu0 %v1011_v6 }
 0x30d   :  { %1650 = vmatprep.subr.mxu1 %v891_v56  ;;  %1678 = vmatprep.subr.mxu0 %v1881_v0 }
 0x30e   :  { %1651 = vmatpush3.msra.mxu1 %v891_v56  ;;  %1679 = vmatpush3.msra.mxu0 %v1010_v7 }
 0x30f   :  { %1652 = vmatprep.subr.mxu1 %v890_v57  ;;  %1680 = vmatprep.subr.mxu0 %v1881_v0 }
 0x310   :  { %1653 = vmatpush3.msra.mxu1 %v890_v57  ;;  %1681 = vmatpush3.msra.mxu0 %v1009_v8 }
 0x311   :  { %1654 = vmatprep.subr.mxu1 %v889_v58  ;;  %1682 = vmatprep.subr.mxu0 %v1881_v0 }
 0x312   :  { %1655 = vmatpush3.msra.mxu1 %v889_v58  ;;  %1683 = vmatpush3.msra.mxu0 %v1008_v9 }
 0x313   :  { %1657 = vmatmul.mubr.f32.vlgmr.msra.gmra.mxu1 %v885_v59  ;;  %1697 = vmatprep.subr.mxu1 %v1881_v0 }
 0x314   :  { %1659 = vmatprep.mubr.f32.mxu1 %v886_v60  ;;  %1698 = vmatpush3.msra.mxu1 %v1018_v62 }
 0x315   :  { %1699 = vmatprep.subr.mxu1 %v1881_v0  ;;  %1684 = vmatprep.subr.mxu0 %v1881_v0 }
 0x316   :  { %1700 = vmatpush3.msra.mxu1 %v1017_v63  ;;  %1685 = vmatpush3.msra.mxu0 %v1007_v10 }
 0x317   :  { %1660 = vmatmul.mubr.f32.gmra.mxu1 %v887_v61  ;;  %1701 = vmatprep.subr.mxu1 %v1881_v0 }
 0x318   :  { %1729 = vmatprep.mubr.msk.f32.mxu1 %vm1882_vm2, %v1881_v0  ;;  %1702 = vmatpush3.msra.mxu1 %v1016_v1 }
 0x319   :  { %1703 = vmatprep.subr.mxu1 %v1881_v0  ;;  %1686 = vmatprep.subr.mxu0 %v1881_v0 }
 0x31a   :  { %1704 = vmatpush3.msra.mxu1 %v1015_v2  ;;  %1687 = vmatpush3.msra.mxu0 %v1006_v11 }
 0x31b   :  { %1705 = vmatprep.subr.mxu1 %v1881_v0  ;;  %1688 = vmatprep.subr.mxu0 %v1881_v0 }
 0x31c   :  { %1706 = vmatpush3.msra.mxu1 %v1014_v3  ;;  %1689 = vmatpush3.msra.mxu0 %v1005_v12 }
 0x31d   :  { %1707 = vmatprep.subr.mxu1 %v1881_v0  ;;  %1690 = vmatprep.subr.mxu0 %v1881_v0 }
 0x31e   :  { %1708 = vmatpush3.msra.mxu1 %v1013_v4  ;;  %1691 = vmatpush3.msra.mxu0 %v1004_v13 }
 0x31f   :  { %1709 = vmatprep.subr.mxu1 %v1881_v0  ;;  %1692 = vmatprep.subr.mxu0 %v1881_v0 }
 0x320   :  { %1710 = vmatpush3.msra.mxu1 %v1012_v5  ;;  %1693 = vmatpush3.msra.mxu0 %v1003_v14 }
 0x321   :  { %1711 = vmatprep.subr.mxu1 %v1881_v0 }
 0x322   :  { %1712 = vmatpush3.msra.mxu1 %v1011_v6  ;;  %v1182_v6 = vld [vmem:[%s2111_s7] sm:$0x1]  ;;  %s1846_s7 = scalar_lea.vmem %s1221_s19, 512 }
 0x323   :  { %1713 = vmatprep.subr.mxu1 %v1881_v0  ;;  %p1847_p11 = scmp.ne.s32.totalorder %s1221_s19, %s1846_s7  ;;  %p1852_p13 = scmp.lt.s32.totalorder %s1846_s7, %s1846_s7 }
 0x324   :  { %1714 = vmatpush3.msra.mxu1 %v1010_v7 }
 0x325   :  { %1715 = vmatprep.subr.mxu1 %v1881_v0  ;;  %p1853_p0 = por %p1852_p13, %p1851_p12 }
 0x326   :  { %1716 = vmatpush3.msra.mxu1 %v1009_v8 }
 0x327   :  { %1717 = vmatprep.subr.mxu1 %v1881_v0  ;;  %p1854_p1 = pnand %p1853_p0, %p1847_p11 }
 0x328   :  { %1718 = vmatpush3.msra.mxu1 %v1008_v9 }
 0x329   :  { %1719 = vmatprep.subr.mxu1 %v1881_v0 }
 0x32a   :  { %1720 = vmatpush3.msra.mxu1 %v1007_v10  ;;  %v1247_v10 = vld [vmem:[%s2112_s8] ss:$0 sm:$0xff] }
 0x32b   :  { %1721 = vmatprep.subr.mxu1 %v1881_v0 }
 0x32c   :  { %1722 = vmatpush3.msra.mxu1 %v1006_v11 }
 0x32d   :  { %1723 = vmatprep.subr.mxu1 %v1881_v0 }
 0x32e   :  { %1724 = vmatpush3.msra.mxu1 %v1005_v12 }
 0x32f   :  { %1725 = vmatprep.subr.mxu1 %v1881_v0 }
 0x330   :  { %1726 = vmatpush3.msra.mxu1 %v1004_v13 }
 0x331   :  { %1727 = vmatprep.subr.mxu1 %v1881_v0 }
 0x332   :  { %1728 = vmatpush3.msra.mxu1 %v1003_v14 }
 0x3b2   :  { %v1582_v15 = vpop.f32.mrf.mxu1 }
 0x3b4   :  { %v780_v17 = vpop.f32.mrf.mxu1 }
 0x3b6   :  { %v1585_v19 = vpop.f32.mrf.mxu1 }
 0x3b8   :  { %v790_v21 = vpop.f32.mrf.mxu1 }
 0x3ba   :  { %v1620_v16 = vpop.f32.mrf.mxu0 }
 0x3bb   :  { %v871_v27 = vadd.f32 %v1620_v16, %v1582_v15 }
 0x3bc   :  { %v865_v18 = vpop.f32.mrf.mxu0 }
 0x3bd   :  { %v866_v23 = vadd.f32 %v865_v18, %v780_v17 }
 0x3be   :  { %v1623_v20 = vpop.f32.mrf.mxu0 }
 0x3bf   :  { %v881_v0 = vadd.f32 %v1623_v20, %v1585_v19 }
 0x3c0   :  { %v875_v24 = vpop.f32.mrf.mxu0 }
 0x3c1   :  { %v876_v34 = vadd.f32 %v875_v24, %v790_v21 }
 0x3d3   :  { %v1658_v22 = vpop.f32.mrf.mxu1 }
 0x3d4   :  { %v991_v35 = vadd.f32 %v1658_v22, %v871_v27 }
 0x3d5   :  { %v971_v26 = vpop.f32.mrf.mxu1 }
 0x3d6   :  { %v990_v28 = vadd.f32 %v971_v26, %v866_v23 }
 0x3d7   :  { %v1661_v29 = vpop.f32.mrf.mxu1 }
 0x3d8   :  { %v994_v37 = vadd.f32 %v991_v35, %v990_v28  ;;  %v993_v39 = vadd.f32 %v1661_v29, %v881_v0 }
 0x3d9   :  { %v981_v36 = vpop.f32.mrf.mxu1 }
 0x3da   :  { %v992_v38 = vadd.f32 %v981_v36, %v876_v34 }
 0x3dc   :  { %v995_v40 = vadd.f32 %v994_v37, %v992_v38 }
 0x3de   :  { %v996_v41 = vadd.f32 %v995_v40, %v993_v39 }
 0x3e0   :  { %v997_v42 = vrot.slane %v996_v41, 4 }
 0x3e2   :  { %v998_v30 = vadd.f32 %v997_v42, %v996_v41 }
 0x3e4   :  { %v999_v31 = vrot.slane %v998_v30, 2 }
 0x3e6   :  { %v1000_v32 = vadd.f32 %v999_v31, %v998_v30 }
 0x3e8   :  { %v1001_v33 = vrot.slane %v1000_v32, 1 }
 0x3ea   :  { %v1002_v43 = vadd.f32 %v1001_v33, %v1000_v32 }
 0x3ec   :  { %1695 = vmatmul.mubr.f32.vlgmr.msra.gmra.mxu0 %v1002_v43 }
 0x4ac   :  { %v1085_v44 = vpop.f32.mrf.mxu0 }
 0x4ad   :  { %v1089_v45 = vmul.f32 0.001953125, %v1085_v44 }
 0x4ae   :  { %v1696_v46 = vpop.f32.mrf.mxu0 }
 0x4af   :  { %v1093_v47 = vrot.slane %v1089_v45, %v2024_v25 }
 0x4b1   :  { %v1094_v48 = vsub.f32 %v990_v28, %v1093_v47  ;;  %v1095_v49 = vsub.f32 %v991_v35, %v1093_v47  ;;  %v1096_v50 = vsub.f32 %v992_v38, %v1093_v47  ;;  %v1097_v51 = vsub.f32 %v993_v39, %v1093_v47 }
 0x4b3   :  { %v1098_v52 = vmul.f32 %v1094_v48, %v1094_v48  ;;  %v1099_v53 = vmul.f32 %v1095_v49, %v1095_v49  ;;  %v1100_v54 = vmul.f32 %v1096_v50, %v1096_v50  ;;  %v1101_v56 = vmul.f32 %v1097_v51, %v1097_v51 }
 0x4b5   :  { %v1102_v55 = vadd.f32 %v1099_v53, %v1098_v52 }
 0x4b7   :  { %v1103_v57 = vadd.f32 %v1102_v55, %v1100_v54 }
 0x4b9   :  { %v1104_v58 = vadd.f32 %v1103_v57, %v1101_v56 }
 0x4bb   :  { %v1105_v59 = vrot.slane %v1104_v58, 4 }
 0x4bd   :  { %v1106_v60 = vadd.f32 %v1105_v59, %v1104_v58 }
 0x4bf   :  { %v1107_v61 = vrot.slane %v1106_v60, 2 }
 0x4c1   :  { %v1108_v62 = vadd.f32 %v1107_v61, %v1106_v60 }
 0x4c3   :  { %v1109_v63 = vrot.slane %v1108_v62, 1 }
 0x4c5   :  { %v1110_v1 = vadd.f32 %v1109_v63, %v1108_v62 }
 0x4c7   :  { %1730 = vmatmul.mubr.f32.vlgmr.msra.gmra.mxu1 %v1110_v1 }
 0x587   :  { %v1177_v2 = vpop.f32.mrf.mxu1 }
 0x588   :  { %v1181_v3 = vmul.f32 0.001953125, %v1177_v2 }
 0x589   :  { %v1731_v4 = vpop.f32.mrf.mxu1 }
 0x58a   :  { %v1183_v5 = vadd.f32 1e-05, %v1181_v3 }
 0x58c   :  { %1744 = vrsqrt.f32 %v1183_v5 }
 0x599   :  { %v1745_v7 = vpop.eup %1744 }
 0x59a   :  { %v1185_v8 = vmul.f32 %v1745_v7, %v1182_v6 }
 0x59c   :  { %v1190_v9 = vrot.slane %v1185_v8, %v2024_v25 }
 0x59e   :  { %v1192_v11 = vmul.f32 %v1190_v9, %v1094_v48  ;;  %v1193_v12 = vmul.f32 %v1190_v9, %v1095_v49  ;;  %v1194_v13 = vmul.f32 %v1190_v9, %v1096_v50  ;;  %v1195_v14 = vmul.f32 %v1190_v9, %v1097_v51 }
 0x5a0   :  { %v1203_v15 = vadd.f32 %v1247_v10, %v1192_v11  ;;  %v1204_v16 = vadd.f32 %v1247_v10, %v1193_v12  ;;  %v1205_v17 = vadd.f32 %v1247_v10, %v1194_v13  ;;  %v1206_v18 = vadd.f32 %v1247_v10, %v1195_v14 }
 0x5a2   :  { %v1207_v19 = vmax.f32 %v1203_v15, 0.0  ;;  %v1208_v20 = vmax.f32 %v1204_v16, 0.0  ;;  %v1209_v21 = vmax.f32 %v1205_v17, 0.0  ;;  %v1210_v22 = vmax.f32 %v1206_v18, 0.0 }
 0x5a4   :  { %1211 = vst [vmem:[#allocation13] sm:$0xff] %v1207_v19  ;;  %1212 = vst [vmem:[#allocation13 + $0x8] sm:$0xff] %v1208_v20 }
 0x5a5   :  { %1213 = vst [vmem:[#allocation13 + $0x10] sm:$0xff] %v1209_v21  ;;  %1214 = vst [vmem:[#allocation13 + $0x18] sm:$0xff] %v1210_v22 }
 0x5a6   :  { %1857 = shalt.err (!%p1854_p1)
}
 0x5a7   :  { %1226 = dma.vmem_to_hbm [thread:$0]  %s1221_s19, 512, %s2113_s9, [#allocation6], %s1876_s14, %s1876_s14, %s1877_s15  }
 0x5a8   :  { %1872 = dma.done.wait [#allocation6], 512  }
 0x5a9   :  { %1873 = vsyncadd [#allocation6], 4294966784 }
 0x5aa   :  { %1230 = vsyncpa [#allocation5], 1 }
 0x5ab   :  { %1231 = vsyncpa [#allocation8], 1 }
 0x5ac   :  { %1232 = vsyncpa [#allocation11], 1 }
 0x5ad   :  { %1233 = vsyncpa [#allocation6], 1 }

</bundles_post_ra>
